<compile_context>
chip_gen: v6e
topology: v6e:2x2x1
jax: 0.10.0
libtpu: 0.0.40
codegen_flags: <defaults>
</compile_context>

<pallas_src>
import functools

import jax
import jax.numpy as jnp
from jax.experimental import pallas as pl
from jax.experimental.pallas import tpu as pltpu

LN_EPS = 1e-5  # torch.nn.LayerNorm default


def _erf_poly(z):
    """Abramowitz & Stegun 7.1.26 erf approximation, |error| <= 1.5e-7.

    Composed only of mul/add/div/exp/where so it always lowers in Mosaic.
    """
    a1, a2, a3, a4, a5 = (0.254829592, -0.284496736, 1.421413741,
                          -1.453152027, 1.061405429)
    p = 0.3275911
    az = jnp.abs(z)
    t = 1.0 / (1.0 + p * az)
    poly = ((((a5 * t + a4) * t + a3) * t + a2) * t + a1) * t
    pos = 1.0 - poly * jnp.exp(-az * az)
    return jnp.where(z < 0.0, -pos, pos)


def _gelu_exact(x):
    # Exact-erf GELU (torch.nn.GELU() default), via the polynomial erf above.
    return 0.5 * x * (1.0 + _erf_poly(x * 0.7071067811865476))


def _fused_transformer_kernel(
    x_ref,       # (B_blk, N, D)   input activations (read only at depth step 0)
    ln1_g_ref,   # (1, 1, D)
    ln1_b_ref,   # (1, 1, D)
    wqkv_ref,    # (1, D, 3*H*Dh)  columns = [q heads | k heads | v heads], q pre-scaled
    wo_ref,      # (1, H*Dh, D)
    bo_ref,      # (1, 1, D)
    ln2_g_ref,   # (1, 1, D)
    ln2_b_ref,   # (1, 1, D)
    w1_ref,      # (1, D, F)
    b1_ref,      # (1, 1, F)
    w2_ref,      # (1, F, D)
    b2_ref,      # (1, 1, D)
    o_ref,       # (B_blk, N, D)   resident carry across the depth axis + final output
    *,
    heads: int,
    dim_head: int,
    matmul_dtype,
):
    H, Dh = heads, dim_head
    inner = H * Dh
    md = matmul_dtype

    # Depth step 0: seed the resident VMEM carry (the output block) with the input.
    @pl.when(pl.program_id(1) == 0)
    def _():
        o_ref[...] = x_ref[...]

    Bb, N, D = o_ref.shape
    M = Bb * N
    # Fold batch into the matmul M dimension (leading-dim merge, no data movement).
    x = o_ref[...].reshape(M, D).astype(jnp.float32)

    # ---------------- PreNorm + multi-head attention ----------------
    mu1 = jnp.mean(x, axis=-1, keepdims=True)
    var1 = jnp.mean(jnp.square(x - mu1), axis=-1, keepdims=True)
    xn1 = (x - mu1) * jax.lax.rsqrt(var1 + LN_EPS) * ln1_g_ref[0] + ln1_b_ref[0]

    # Fused QKV: one (M, D) @ (D, 3*H*Dh) matmul. Softmax scale already folded
    # into the q columns at pack time.
    qkv = jnp.dot(xn1.astype(md), wqkv_ref[0].astype(md),
                  preferred_element_type=jnp.float32)              # (M, 3*inner)

    # Attention core is inherently per-(batch, head); heads are a short static
    # unroll, batch stays a single einsum batch dim (well-supported lowering).
    ctx_heads = []
    for h in range(H):
        qh = qkv[:, h * Dh:(h + 1) * Dh].reshape(Bb, N, Dh)
        kh = qkv[:, inner + h * Dh: inner + (h + 1) * Dh].reshape(Bb, N, Dh)
        vh = qkv[:, 2 * inner + h * Dh: 2 * inner + (h + 1) * Dh].reshape(Bb, N, Dh)

        s = jnp.einsum('bne,bme->bnm', qh.astype(md), kh.astype(md),
                       preferred_element_type=jnp.float32)         # (Bb, N, N)
        s = s - jnp.max(s, axis=-1, keepdims=True)
        e = jnp.exp(s)
        p = e * pl.reciprocal(jnp.sum(e, axis=-1, keepdims=True), approx=True)

        ctx_h = jnp.einsum('bnm,bme->bne', p.astype(md), vh.astype(md),
                           preferred_element_type=jnp.float32)     # (Bb, N, Dh)
        ctx_heads.append(ctx_h.reshape(M, Dh))

    # Head concat along lanes (matches torch 'b h n d -> b n (h d)') then a
    # single output-projection matmul (no per-head matmuls / head-axis reduce).
    ctx = jnp.concatenate(ctx_heads, axis=-1)                       # (M, inner)
    attn_out = jnp.dot(ctx.astype(md), wo_ref[0].astype(md),
                       preferred_element_type=jnp.float32) + bo_ref[0]

    x1 = x + attn_out                                               # residual

    # ---------------- PreNorm + FeedForward ----------------
    mu2 = jnp.mean(x1, axis=-1, keepdims=True)
    var2 = jnp.mean(jnp.square(x1 - mu2), axis=-1, keepdims=True)
    xn2 = (x1 - mu2) * jax.lax.rsqrt(var2 + LN_EPS) * ln2_g_ref[0] + ln2_b_ref[0]

    h1 = jnp.dot(xn2.astype(md), w1_ref[0].astype(md),
                 preferred_element_type=jnp.float32) + b1_ref[0]
    h1 = _gelu_exact(h1)                       # exact-erf GELU (torch.nn.GELU())
    h2 = jnp.dot(h1.astype(md), w2_ref[0].astype(md),
                 preferred_element_type=jnp.float32) + b2_ref[0]

    o_ref[...] = (x1 + h2).reshape(Bb, N, D).astype(o_ref.dtype)    # residual
    # dropout = 0.0 in the reference config -> identity


def transformer_blocks(x, packed_params, *, heads, dim_head,
                       matmul_dtype=jnp.float32, batch_block=None):
    """Single fused Pallas call for all layers.

    batch_block: per-grid-step batch chunk.  Default = full batch (minimum weight
      DMA traffic).  On v7x set batch_block = B // 2 so the 'parallel' batch axis
      can shard across the two TensorCores.
    matmul_dtype: jnp.bfloat16 on v6e/v7x for MXU peak (f32 accumulation kept);
      default float32 preserves exact reference numerics.
    """
    B, N, D = x.shape
    (ln1_g, ln1_b, wqkv, wo, bo, ln2_g, ln2_b, w1, b1, w2, b2) = packed_params
    depth = ln1_g.shape[0]

    if batch_block is None:
        batch_block = B
    assert B % batch_block == 0, "batch must be divisible by batch_block"

    kernel = functools.partial(_fused_transformer_kernel,
                               heads=heads, dim_head=dim_head,
                               matmul_dtype=matmul_dtype)

    def wspec(shape):
        # One layer's slice per depth step; constant w.r.t. the batch axis, so a
        # layer's weights are fetched once per batch block (not once per element).
        nd = len(shape)
        return pl.BlockSpec((1,) + tuple(shape[1:]),
                            lambda b, d, _nd=nd: (d,) + (0,) * (_nd - 1))

    x_spec = pl.BlockSpec((batch_block, N, D), lambda b, d: (b, 0, 0))  # const over depth
    o_spec = pl.BlockSpec((batch_block, N, D), lambda b, d: (b, 0, 0))  # resident carry
    # NOTE: the depth-resident carry requires depth to be the LAST grid axis and
    # marked "arbitrary"; do not reorder the grid.

    weights = (ln1_g, ln1_b, wqkv, wo, bo, ln2_g, ln2_b, w1, b1, w2, b2)
    in_specs = [x_spec] + [wspec(w.shape) for w in weights]

    return pl.pallas_call(
        kernel,
        out_shape=jax.ShapeDtypeStruct((B, N, D), x.dtype),
        grid_spec=pltpu.PrefetchScalarGridSpec(
            num_scalar_prefetch=0,
            grid=(B // batch_block, depth),      # batch parallel, depth sequential
            in_specs=in_specs,
            out_specs=o_spec,
        ),
        compiler_params=pltpu.CompilerParams(
            dimension_semantics=("parallel", "arbitrary"),
            vmem_limit_bytes=32 * 1024 * 1024,   # safe on v5e/v6e/v7x at these dims
        ),
    )(x, *weights)


def init_raw_params(key, *, dim, depth, heads, dim_head, mlp_dim):
    """Deterministic synthetic parameters in 'PyTorch-transposed' layout.

    Mapping from the PyTorch module (per layer d):
      wqkv[d] = to_qkv.weight.T          (dim, 3*H*Dh), columns = [q|k|v] head-major
      wo[d]   = to_out[0].weight.T       (H*Dh, dim)
      w1/w2   = Linear.weight.T, biases as vectors.
    """
    inner = heads * dim_head
    ks = jax.random.split(key, 4)
    f32 = jnp.float32
    return dict(
        ln1_g=jnp.ones((depth, dim), f32),
        ln1_b=jnp.zeros((depth, dim), f32),
        wqkv=jax.random.normal(ks[0], (depth, dim, 3 * inner), f32) * 0.02,
        wo=jax.random.normal(ks[1], (depth, inner, dim), f32) * 0.02,
        bo=jnp.zeros((depth, dim), f32),
        ln2_g=jnp.ones((depth, dim), f32),
        ln2_b=jnp.zeros((depth, dim), f32),
        w1=jax.random.normal(ks[2], (depth, dim, mlp_dim), f32) * 0.02,
        b1=jnp.zeros((depth, mlp_dim), f32),
        w2=jax.random.normal(ks[3], (depth, mlp_dim, dim), f32) * 0.02,
        b2=jnp.zeros((depth, dim), f32),
    )


def pack_params(raw, *, heads, dim_head, weights_dtype=jnp.float32):
    """Pack raw params for the kernel: fold softmax scale into W_q, reshape
    biases/LN params to (depth, 1, dim), optionally cast matmul weights to bf16
    (halves weight HBM traffic on v6e/v7x)."""
    inner = heads * dim_head
    scale = float(dim_head) ** -0.5
    wqkv = raw['wqkv'].at[:, :, :inner].multiply(scale)   # fold scale into W_q (free)

    def wd(a):
        return a.astype(weights_dtype)

    def row(a):
        return a[:, None, :]

    return (
        row(raw['ln1_g']), row(raw['ln1_b']),
        wd(wqkv), wd(raw['wo']), row(raw['bo']),
        row(raw['ln2_g']), row(raw['ln2_b']),
        wd(raw['w1']), row(raw['b1']),
        wd(raw['w2']), row(raw['b2']),
    )


def reference_transformer_blocks(x, raw, *, heads, dim_head):
    """Pure-JAX reference (same math as the PyTorch module, explicit scale)."""
    depth = raw['ln1_g'].shape[0]
    H, Dh = heads, dim_head
    inner = H * Dh
    scale = float(dim_head) ** -0.5

    def ln(v, g, b):
        mu = jnp.mean(v, axis=-1, keepdims=True)
        var = jnp.mean((v - mu) ** 2, axis=-1, keepdims=True)
        return (v - mu) * jax.lax.rsqrt(var + LN_EPS) * g + b

    B, N, D = x.shape
    for d in range(depth):
        xn = ln(x, raw['ln1_g'][d], raw['ln1_b'][d])
        qkv = xn @ raw['wqkv'][d]                               # (B, N, 3*inner)
        q = qkv[..., :inner].reshape(B, N, H, Dh)
        k = qkv[..., inner:2 * inner].reshape(B, N, H, Dh)
        v = qkv[..., 2 * inner:].reshape(B, N, H, Dh)
        s = jnp.einsum('bnhe,bmhe->bhnm', q, k) * scale
        p = jax.nn.softmax(s, axis=-1)
        ctx = jnp.einsum('bhnm,bmhe->bnhe', p, v).reshape(B, N, inner)
        x = x + ctx @ raw['wo'][d] + raw['bo'][d]
        xn2 = ln(x, raw['ln2_g'][d], raw['ln2_b'][d])
        h = jax.nn.gelu(xn2 @ raw['w1'][d] + raw['b1'][d], approximate=False)
        x = x + h @ raw['w2'][d] + raw['b2'][d]
    return x


if __name__ == "__main__":
    # Small config consistent with the module: dim=32, depth=2, heads=4, dim_head=8, mlp_dim=64
    B, N, dim = 2, 8, 32
    depth, heads, dim_head, mlp_dim = 2, 4, 8, 64

    key = jax.random.PRNGKey(0)
    kx, kp = jax.random.split(key)
    x = jax.random.normal(kx, (B, N, dim), jnp.float32)

    raw = init_raw_params(kp, dim=dim, depth=depth, heads=heads,
                          dim_head=dim_head, mlp_dim=mlp_dim)
    packed = pack_params(raw, heads=heads, dim_head=dim_head)  # f32 weights for parity

    out = transformer_blocks(x, packed, heads=heads, dim_head=dim_head)
    out = jax.block_until_ready(out)

    assert out.shape == (B, N, dim) and out.dtype == jnp.float32
    ref = reference_transformer_blocks(x, raw, heads=heads, dim_head=dim_head)
    assert jnp.allclose(out, ref, atol=2e-3, rtol=2e-3), \
        f"max abs diff {float(jnp.max(jnp.abs(out - ref)))}"
    print("KERNEL_OK")
</pallas_src>

<mosaic_0001>
module attributes {stable_mosaic.version = 11 : i64} {
  func.func @_fused_transformer_kernel(%arg0: i32, %arg1: i32, %arg2: memref<2x8x32xf32, #tpu.memory_space<vmem>>, %arg3: memref<1x1x32xf32, #tpu.memory_space<vmem>>, %arg4: memref<1x1x32xf32, #tpu.memory_space<vmem>>, %arg5: memref<1x32x96xf32, #tpu.memory_space<vmem>>, %arg6: memref<1x32x32xf32, #tpu.memory_space<vmem>>, %arg7: memref<1x1x32xf32, #tpu.memory_space<vmem>>, %arg8: memref<1x1x32xf32, #tpu.memory_space<vmem>>, %arg9: memref<1x1x32xf32, #tpu.memory_space<vmem>>, %arg10: memref<1x32x64xf32, #tpu.memory_space<vmem>>, %arg11: memref<1x1x64xf32, #tpu.memory_space<vmem>>, %arg12: memref<1x64x32xf32, #tpu.memory_space<vmem>>, %arg13: memref<1x1x32xf32, #tpu.memory_space<vmem>>, %arg14: memref<2x8x32xf32, #tpu.memory_space<vmem>>) attributes {dimension_semantics = [#tpu.dimension_semantics<parallel>, #tpu.dimension_semantics<arbitrary>], iteration_bounds = array<i64: 1, 2>, scalar_prefetch = 0 : i64, scratch_operands = 0 : i64, tpu.core_type = #tpu.core_type<tc>, window_params = [{transform_indices = @transform_0, window_bounds = array<i64: 2, 8, 32>}, {transform_indices = @transform_1, window_bounds = array<i64: 1, 1, 32>}, {transform_indices = @transform_2, window_bounds = array<i64: 1, 1, 32>}, {transform_indices = @transform_3, window_bounds = array<i64: 1, 32, 96>}, {transform_indices = @transform_4, window_bounds = array<i64: 1, 32, 32>}, {transform_indices = @transform_5, window_bounds = array<i64: 1, 1, 32>}, {transform_indices = @transform_6, window_bounds = array<i64: 1, 1, 32>}, {transform_indices = @transform_7, window_bounds = array<i64: 1, 1, 32>}, {transform_indices = @transform_8, window_bounds = array<i64: 1, 32, 64>}, {transform_indices = @transform_9, window_bounds = array<i64: 1, 1, 64>}, {transform_indices = @transform_10, window_bounds = array<i64: 1, 64, 32>}, {transform_indices = @transform_11, window_bounds = array<i64: 1, 1, 32>}, {transform_indices = @transform_12, window_bounds = array<i64: 2, 8, 32>}]} {
    %c0_i32 = arith.constant 0 : i32
    %0 = arith.cmpi eq, %arg1, %c0_i32 : i32
    %1 = arith.extui %0 : i1 to i32
    %c0_i32_0 = arith.constant 0 : i32
    %2 = arith.cmpi ne, %1, %c0_i32_0 : i32
    scf.if %2 {
      %c0_83 = arith.constant 0 : index
      %c0_84 = arith.constant 0 : index
      %c0_85 = arith.constant 0 : index
      %202 = vector.load %arg2[%c0_83, %c0_84, %c0_85] : memref<2x8x32xf32, #tpu.memory_space<vmem>>, vector<2x8x32xf32>
      %c0_86 = arith.constant 0 : index
      %c0_87 = arith.constant 0 : index
      %c0_88 = arith.constant 0 : index
      %203 = vector.load %arg14[%c0_86, %c0_87, %c0_88] : memref<2x8x32xf32, #tpu.memory_space<vmem>>, vector<2x8x32xf32>
      tpu.vector_store %arg14[%c0_86, %c0_87, %c0_88], %202 {strides = array<i32>} : memref<2x8x32xf32, #tpu.memory_space<vmem>>, vector<2x8x32xf32>,
    } else {
    }
    %c0 = arith.constant 0 : index
    %c0_1 = arith.constant 0 : index
    %c0_2 = arith.constant 0 : index
    %3 = vector.load %arg14[%c0, %c0_1, %c0_2] : memref<2x8x32xf32, #tpu.memory_space<vmem>>, vector<2x8x32xf32>
    %4 = vector.shape_cast %3 : vector<2x8x32xf32> to vector<16x32xf32>
    %cst = arith.constant dense<0.000000e+00> : vector<16xf32>
    %5 = vector.multi_reduction <add>, %4, %cst [1] : vector<16x32xf32> to vector<16xf32>
    %6 = vector.shape_cast %5 : vector<16xf32> to vector<16x1xf32>
    %cst_3 = arith.constant 3.200000e+01 : f32
    %7 = vector.broadcast %cst_3 : f32 to vector<16x1xf32>
    %8 = arith.divf %6, %7 : vector<16x1xf32>
    %9 = vector.broadcast %8 : vector<16x1xf32> to vector<16x32xf32>
    %10 = arith.subf %4, %9 : vector<16x32xf32>
    %11 = arith.mulf %10, %10 : vector<16x32xf32>
    %cst_4 = arith.constant dense<0.000000e+00> : vector<16xf32>
    %12 = vector.multi_reduction <add>, %11, %cst_4 [1] : vector<16x32xf32> to vector<16xf32>
    %13 = vector.shape_cast %12 : vector<16xf32> to vector<16x1xf32>
    %cst_5 = arith.constant 3.200000e+01 : f32
    %14 = vector.broadcast %cst_5 : f32 to vector<16x1xf32>
    %15 = arith.divf %13, %14 : vector<16x1xf32>
    %16 = vector.broadcast %8 : vector<16x1xf32> to vector<16x32xf32>
    %17 = arith.subf %4, %16 : vector<16x32xf32>
    %cst_6 = arith.constant 9.99999974E-6 : f32
    %18 = vector.broadcast %cst_6 : f32 to vector<16x1xf32>
    %19 = arith.addf %15, %18 : vector<16x1xf32>
    %20 = math.rsqrt %19 : vector<16x1xf32>
    %21 = vector.broadcast %20 : vector<16x1xf32> to vector<16x32xf32>
    %22 = arith.mulf %17, %21 : vector<16x32xf32>
    %c0_7 = arith.constant 0 : index
    %c0_8 = arith.constant 0 : index
    %c0_9 = arith.constant 0 : index
    %23 = vector.load %arg3[%c0_7, %c0_8, %c0_9] : memref<1x1x32xf32, #tpu.memory_space<vmem>>, vector<1x1x32xf32>
    %24 = vector.shape_cast %23 : vector<1x1x32xf32> to vector<1x32xf32>
    %25 = vector.broadcast %24 : vector<1x32xf32> to vector<16x32xf32>
    %26 = arith.mulf %22, %25 : vector<16x32xf32>
    %c0_10 = arith.constant 0 : index
    %c0_11 = arith.constant 0 : index
    %c0_12 = arith.constant 0 : index
    %27 = vector.load %arg4[%c0_10, %c0_11, %c0_12] : memref<1x1x32xf32, #tpu.memory_space<vmem>>, vector<1x1x32xf32>
    %28 = vector.shape_cast %27 : vector<1x1x32xf32> to vector<1x32xf32>
    %29 = vector.broadcast %28 : vector<1x32xf32> to vector<16x32xf32>
    %30 = arith.addf %26, %29 : vector<16x32xf32>
    %c0_13 = arith.constant 0 : index
    %c0_14 = arith.constant 0 : index
    %c0_15 = arith.constant 0 : index
    %31 = vector.load %arg5[%c0_13, %c0_14, %c0_15] : memref<1x32x96xf32, #tpu.memory_space<vmem>>, vector<1x32x96xf32>
    %32 = vector.shape_cast %31 : vector<1x32x96xf32> to vector<32x96xf32>
    %cst_16 = arith.constant dense<0.000000e+00> : vector<16x96xf32>
    %33 = tpu.matmul %30, %32, %cst_16 {dimension_numbers = #tpu.dot_dimension_numbers<[1], [0], [0], [1], [0, 0, 1, 1], [], []>} : vector<16x32xf32>, vector<32x96xf32>, vector<16x96xf32> -> vector<16x96xf32>
    %34 = vector.extract_strided_slice %33 {offsets = [0, 0], sizes = [16, 8], strides = [1, 1]} : vector<16x96xf32> to vector<16x8xf32>
    %35 = vector.shape_cast %34 : vector<16x8xf32> to vector<2x8x8xf32>
    %36 = vector.extract_strided_slice %33 {offsets = [0, 32], sizes = [16, 8], strides = [1, 1]} : vector<16x96xf32> to vector<16x8xf32>
    %37 = vector.shape_cast %36 : vector<16x8xf32> to vector<2x8x8xf32>
    %38 = vector.extract_strided_slice %33 {offsets = [0, 64], sizes = [16, 8], strides = [1, 1]} : vector<16x96xf32> to vector<16x8xf32>
    %39 = vector.shape_cast %38 : vector<16x8xf32> to vector<2x8x8xf32>
    "tpu.trace_start"() <{level = 10 : i32, message = "bne,bme->bnm"}> : () -> ()
    %cst_17 = arith.constant dense<0.000000e+00> : vector<2x8x8xf32>
    %40 = tpu.matmul %35, %37, %cst_17 {dimension_numbers = #tpu.dot_dimension_numbers<[2], [2], [1], [1], [0, 0, 0, 1, 1, 1], [0], [0]>} : vector<2x8x8xf32>, vector<2x8x8xf32>, vector<2x8x8xf32> -> vector<2x8x8xf32>
    "tpu.trace_stop"() : () -> ()
    %cst_18 = arith.constant dense<0xFF800000> : vector<2x8xf32>
    %41 = vector.multi_reduction <maximumf>, %40, %cst_18 [2] : vector<2x8x8xf32> to vector<2x8xf32>
    %42 = vector.shape_cast %41 : vector<2x8xf32> to vector<2x8x1xf32>
    %43 = vector.broadcast %42 : vector<2x8x1xf32> to vector<2x8x8xf32>
    %44 = arith.subf %40, %43 : vector<2x8x8xf32>
    %45 = math.exp %44 : vector<2x8x8xf32>
    %cst_19 = arith.constant dense<0.000000e+00> : vector<2x8xf32>
    %46 = vector.multi_reduction <add>, %45, %cst_19 [2] : vector<2x8x8xf32> to vector<2x8xf32>
    %47 = vector.shape_cast %46 : vector<2x8xf32> to vector<2x8x1xf32>
    %48 = tpu.reciprocal %47 {approx = true} : vector<2x8x1xf32> -> vector<2x8x1xf32>
    %49 = vector.broadcast %48 : vector<2x8x1xf32> to vector<2x8x8xf32>
    %50 = arith.mulf %45, %49 : vector<2x8x8xf32>
    "tpu.trace_start"() <{level = 10 : i32, message = "bnm,bme->bne"}> : () -> ()
    %cst_20 = arith.constant dense<0.000000e+00> : vector<2x8x8xf32>
    %51 = tpu.matmul %50, %39, %cst_20 {dimension_numbers = #tpu.dot_dimension_numbers<[2], [1], [1], [2], [0, 0, 0, 1, 1, 2], [0], [0]>} : vector<2x8x8xf32>, vector<2x8x8xf32>, vector<2x8x8xf32> -> vector<2x8x8xf32>
    "tpu.trace_stop"() : () -> ()
    %52 = vector.shape_cast %51 : vector<2x8x8xf32> to vector<16x8xf32>
    %53 = vector.extract_strided_slice %33 {offsets = [0, 8], sizes = [16, 8], strides = [1, 1]} : vector<16x96xf32> to vector<16x8xf32>
    %54 = vector.shape_cast %53 : vector<16x8xf32> to vector<2x8x8xf32>
    %55 = vector.extract_strided_slice %33 {offsets = [0, 40], sizes = [16, 8], strides = [1, 1]} : vector<16x96xf32> to vector<16x8xf32>
    %56 = vector.shape_cast %55 : vector<16x8xf32> to vector<2x8x8xf32>
    %57 = vector.extract_strided_slice %33 {offsets = [0, 72], sizes = [16, 8], strides = [1, 1]} : vector<16x96xf32> to vector<16x8xf32>
    %58 = vector.shape_cast %57 : vector<16x8xf32> to vector<2x8x8xf32>
    "tpu.trace_start"() <{level = 10 : i32, message = "bne,bme->bnm"}> : () -> ()
    %cst_21 = arith.constant dense<0.000000e+00> : vector<2x8x8xf32>
    %59 = tpu.matmul %54, %56, %cst_21 {dimension_numbers = #tpu.dot_dimension_numbers<[2], [2], [1], [1], [0, 0, 0, 1, 1, 1], [0], [0]>} : vector<2x8x8xf32>, vector<2x8x8xf32>, vector<2x8x8xf32> -> vector<2x8x8xf32>
    "tpu.trace_stop"() : () -> ()
    %cst_22 = arith.constant dense<0xFF800000> : vector<2x8xf32>
    %60 = vector.multi_reduction <maximumf>, %59, %cst_22 [2] : vector<2x8x8xf32> to vector<2x8xf32>
    %61 = vector.shape_cast %60 : vector<2x8xf32> to vector<2x8x1xf32>
    %62 = vector.broadcast %61 : vector<2x8x1xf32> to vector<2x8x8xf32>
    %63 = arith.subf %59, %62 : vector<2x8x8xf32>
    %64 = math.exp %63 : vector<2x8x8xf32>
    %cst_23 = arith.constant dense<0.000000e+00> : vector<2x8xf32>
    %65 = vector.multi_reduction <add>, %64, %cst_23 [2] : vector<2x8x8xf32> to vector<2x8xf32>
    %66 = vector.shape_cast %65 : vector<2x8xf32> to vector<2x8x1xf32>
    %67 = tpu.reciprocal %66 {approx = true} : vector<2x8x1xf32> -> vector<2x8x1xf32>
    %68 = vector.broadcast %67 : vector<2x8x1xf32> to vector<2x8x8xf32>
    %69 = arith.mulf %64, %68 : vector<2x8x8xf32>
    "tpu.trace_start"() <{level = 10 : i32, message = "bnm,bme->bne"}> : () -> ()
    %cst_24 = arith.constant dense<0.000000e+00> : vector<2x8x8xf32>
    %70 = tpu.matmul %69, %58, %cst_24 {dimension_numbers = #tpu.dot_dimension_numbers<[2], [1], [1], [2], [0, 0, 0, 1, 1, 2], [0], [0]>} : vector<2x8x8xf32>, vector<2x8x8xf32>, vector<2x8x8xf32> -> vector<2x8x8xf32>
    "tpu.trace_stop"() : () -> ()
    %71 = vector.shape_cast %70 : vector<2x8x8xf32> to vector<16x8xf32>
    %72 = vector.extract_strided_slice %33 {offsets = [0, 16], sizes = [16, 8], strides = [1, 1]} : vector<16x96xf32> to vector<16x8xf32>
    %73 = vector.shape_cast %72 : vector<16x8xf32> to vector<2x8x8xf32>
    %74 = vector.extract_strided_slice %33 {offsets = [0, 48], sizes = [16, 8], strides = [1, 1]} : vector<16x96xf32> to vector<16x8xf32>
    %75 = vector.shape_cast %74 : vector<16x8xf32> to vector<2x8x8xf32>
    %76 = vector.extract_strided_slice %33 {offsets = [0, 80], sizes = [16, 8], strides = [1, 1]} : vector<16x96xf32> to vector<16x8xf32>
    %77 = vector.shape_cast %76 : vector<16x8xf32> to vector<2x8x8xf32>
    "tpu.trace_start"() <{level = 10 : i32, message = "bne,bme->bnm"}> : () -> ()
    %cst_25 = arith.constant dense<0.000000e+00> : vector<2x8x8xf32>
    %78 = tpu.matmul %73, %75, %cst_25 {dimension_numbers = #tpu.dot_dimension_numbers<[2], [2], [1], [1], [0, 0, 0, 1, 1, 1], [0], [0]>} : vector<2x8x8xf32>, vector<2x8x8xf32>, vector<2x8x8xf32> -> vector<2x8x8xf32>
    "tpu.trace_stop"() : () -> ()
    %cst_26 = arith.constant dense<0xFF800000> : vector<2x8xf32>
    %79 = vector.multi_reduction <maximumf>, %78, %cst_26 [2] : vector<2x8x8xf32> to vector<2x8xf32>
    %80 = vector.shape_cast %79 : vector<2x8xf32> to vector<2x8x1xf32>
    %81 = vector.broadcast %80 : vector<2x8x1xf32> to vector<2x8x8xf32>
    %82 = arith.subf %78, %81 : vector<2x8x8xf32>
    %83 = math.exp %82 : vector<2x8x8xf32>
    %cst_27 = arith.constant dense<0.000000e+00> : vector<2x8xf32>
    %84 = vector.multi_reduction <add>, %83, %cst_27 [2] : vector<2x8x8xf32> to vector<2x8xf32>
    %85 = vector.shape_cast %84 : vector<2x8xf32> to vector<2x8x1xf32>
    %86 = tpu.reciprocal %85 {approx = true} : vector<2x8x1xf32> -> vector<2x8x1xf32>
    %87 = vector.broadcast %86 : vector<2x8x1xf32> to vector<2x8x8xf32>
    %88 = arith.mulf %83, %87 : vector<2x8x8xf32>
    "tpu.trace_start"() <{level = 10 : i32, message = "bnm,bme->bne"}> : () -> ()
    %cst_28 = arith.constant dense<0.000000e+00> : vector<2x8x8xf32>
    %89 = tpu.matmul %88, %77, %cst_28 {dimension_numbers = #tpu.dot_dimension_numbers<[2], [1], [1], [2], [0, 0, 0, 1, 1, 2], [0], [0]>} : vector<2x8x8xf32>, vector<2x8x8xf32>, vector<2x8x8xf32> -> vector<2x8x8xf32>
    "tpu.trace_stop"() : () -> ()
    %90 = vector.shape_cast %89 : vector<2x8x8xf32> to vector<16x8xf32>
    %91 = vector.extract_strided_slice %33 {offsets = [0, 24], sizes = [16, 8], strides = [1, 1]} : vector<16x96xf32> to vector<16x8xf32>
    %92 = vector.shape_cast %91 : vector<16x8xf32> to vector<2x8x8xf32>
    %93 = vector.extract_strided_slice %33 {offsets = [0, 56], sizes = [16, 8], strides = [1, 1]} : vector<16x96xf32> to vector<16x8xf32>
    %94 = vector.shape_cast %93 : vector<16x8xf32> to vector<2x8x8xf32>
    %95 = vector.extract_strided_slice %33 {offsets = [0, 88], sizes = [16, 8], strides = [1, 1]} : vector<16x96xf32> to vector<16x8xf32>
    %96 = vector.shape_cast %95 : vector<16x8xf32> to vector<2x8x8xf32>
    "tpu.trace_start"() <{level = 10 : i32, message = "bne,bme->bnm"}> : () -> ()
    %cst_29 = arith.constant dense<0.000000e+00> : vector<2x8x8xf32>
    %97 = tpu.matmul %92, %94, %cst_29 {dimension_numbers = #tpu.dot_dimension_numbers<[2], [2], [1], [1], [0, 0, 0, 1, 1, 1], [0], [0]>} : vector<2x8x8xf32>, vector<2x8x8xf32>, vector<2x8x8xf32> -> vector<2x8x8xf32>
    "tpu.trace_stop"() : () -> ()
    %cst_30 = arith.constant dense<0xFF800000> : vector<2x8xf32>
    %98 = vector.multi_reduction <maximumf>, %97, %cst_30 [2] : vector<2x8x8xf32> to vector<2x8xf32>
    %99 = vector.shape_cast %98 : vector<2x8xf32> to vector<2x8x1xf32>
    %100 = vector.broadcast %99 : vector<2x8x1xf32> to vector<2x8x8xf32>
    %101 = arith.subf %97, %100 : vector<2x8x8xf32>
    %102 = math.exp %101 : vector<2x8x8xf32>
    %cst_31 = arith.constant dense<0.000000e+00> : vector<2x8xf32>
    %103 = vector.multi_reduction <add>, %102, %cst_31 [2] : vector<2x8x8xf32> to vector<2x8xf32>
    %104 = vector.shape_cast %103 : vector<2x8xf32> to vector<2x8x1xf32>
    %105 = tpu.reciprocal %104 {approx = true} : vector<2x8x1xf32> -> vector<2x8x1xf32>
    %106 = vector.broadcast %105 : vector<2x8x1xf32> to vector<2x8x8xf32>
    %107 = arith.mulf %102, %106 : vector<2x8x8xf32>
    "tpu.trace_start"() <{level = 10 : i32, message = "bnm,bme->bne"}> : () -> ()
    %cst_32 = arith.constant dense<0.000000e+00> : vector<2x8x8xf32>
    %108 = tpu.matmul %107, %96, %cst_32 {dimension_numbers = #tpu.dot_dimension_numbers<[2], [1], [1], [2], [0, 0, 0, 1, 1, 2], [0], [0]>} : vector<2x8x8xf32>, vector<2x8x8xf32>, vector<2x8x8xf32> -> vector<2x8x8xf32>
    "tpu.trace_stop"() : () -> ()
    %109 = vector.shape_cast %108 : vector<2x8x8xf32> to vector<16x8xf32>
    %110 = tpu.concatenate %52, %71, %90, %109 in 1 : vector<16x8xf32>, vector<16x8xf32>, vector<16x8xf32>, vector<16x8xf32> -> vector<16x32xf32>
    %c0_33 = arith.constant 0 : index
    %c0_34 = arith.constant 0 : index
    %c0_35 = arith.constant 0 : index
    %111 = vector.load %arg6[%c0_33, %c0_34, %c0_35] : memref<1x32x32xf32, #tpu.memory_space<vmem>>, vector<1x32x32xf32>
    %112 = vector.shape_cast %111 : vector<1x32x32xf32> to vector<32x32xf32>
    %cst_36 = arith.constant dense<0.000000e+00> : vector<16x32xf32>
    %113 = tpu.matmul %110, %112, %cst_36 {dimension_numbers = #tpu.dot_dimension_numbers<[1], [0], [0], [1], [0, 0, 1, 1], [], []>} : vector<16x32xf32>, vector<32x32xf32>, vector<16x32xf32> -> vector<16x32xf32>
    %c0_37 = arith.constant 0 : index
    %c0_38 = arith.constant 0 : index
    %c0_39 = arith.constant 0 : index
    %114 = vector.load %arg7[%c0_37, %c0_38, %c0_39] : memref<1x1x32xf32, #tpu.memory_space<vmem>>, vector<1x1x32xf32>
    %115 = vector.shape_cast %114 : vector<1x1x32xf32> to vector<1x32xf32>
    %116 = vector.broadcast %115 : vector<1x32xf32> to vector<16x32xf32>
    %117 = arith.addf %113, %116 : vector<16x32xf32>
    %118 = arith.addf %4, %117 : vector<16x32xf32>
    %cst_40 = arith.constant dense<0.000000e+00> : vector<16xf32>
    %119 = vector.multi_reduction <add>, %118, %cst_40 [1] : vector<16x32xf32> to vector<16xf32>
    %120 = vector.shape_cast %119 : vector<16xf32> to vector<16x1xf32>
    %cst_41 = arith.constant 3.200000e+01 : f32
    %121 = vector.broadcast %cst_41 : f32 to vector<16x1xf32>
    %122 = arith.divf %120, %121 : vector<16x1xf32>
    %123 = vector.broadcast %122 : vector<16x1xf32> to vector<16x32xf32>
    %124 = arith.subf %118, %123 : vector<16x32xf32>
    %125 = arith.mulf %124, %124 : vector<16x32xf32>
    %cst_42 = arith.constant dense<0.000000e+00> : vector<16xf32>
    %126 = vector.multi_reduction <add>, %125, %cst_42 [1] : vector<16x32xf32> to vector<16xf32>
    %127 = vector.shape_cast %126 : vector<16xf32> to vector<16x1xf32>
    %cst_43 = arith.constant 3.200000e+01 : f32
    %128 = vector.broadcast %cst_43 : f32 to vector<16x1xf32>
    %129 = arith.divf %127, %128 : vector<16x1xf32>
    %130 = vector.broadcast %122 : vector<16x1xf32> to vector<16x32xf32>
    %131 = arith.subf %118, %130 : vector<16x32xf32>
    %cst_44 = arith.constant 9.99999974E-6 : f32
    %132 = vector.broadcast %cst_44 : f32 to vector<16x1xf32>
    %133 = arith.addf %129, %132 : vector<16x1xf32>
    %134 = math.rsqrt %133 : vector<16x1xf32>
    %135 = vector.broadcast %134 : vector<16x1xf32> to vector<16x32xf32>
    %136 = arith.mulf %131, %135 : vector<16x32xf32>
    %c0_45 = arith.constant 0 : index
    %c0_46 = arith.constant 0 : index
    %c0_47 = arith.constant 0 : index
    %137 = vector.load %arg8[%c0_45, %c0_46, %c0_47] : memref<1x1x32xf32, #tpu.memory_space<vmem>>, vector<1x1x32xf32>
    %138 = vector.shape_cast %137 : vector<1x1x32xf32> to vector<1x32xf32>
    %139 = vector.broadcast %138 : vector<1x32xf32> to vector<16x32xf32>
    %140 = arith.mulf %136, %139 : vector<16x32xf32>
    %c0_48 = arith.constant 0 : index
    %c0_49 = arith.constant 0 : index
    %c0_50 = arith.constant 0 : index
    %141 = vector.load %arg9[%c0_48, %c0_49, %c0_50] : memref<1x1x32xf32, #tpu.memory_space<vmem>>, vector<1x1x32xf32>
    %142 = vector.shape_cast %141 : vector<1x1x32xf32> to vector<1x32xf32>
    %143 = vector.broadcast %142 : vector<1x32xf32> to vector<16x32xf32>
    %144 = arith.addf %140, %143 : vector<16x32xf32>
    %c0_51 = arith.constant 0 : index
    %c0_52 = arith.constant 0 : index
    %c0_53 = arith.constant 0 : index
    %145 = vector.load %arg10[%c0_51, %c0_52, %c0_53] : memref<1x32x64xf32, #tpu.memory_space<vmem>>, vector<1x32x64xf32>
    %146 = vector.shape_cast %145 : vector<1x32x64xf32> to vector<32x64xf32>
    %cst_54 = arith.constant dense<0.000000e+00> : vector<16x64xf32>
    %147 = tpu.matmul %144, %146, %cst_54 {dimension_numbers = #tpu.dot_dimension_numbers<[1], [0], [0], [1], [0, 0, 1, 1], [], []>} : vector<16x32xf32>, vector<32x64xf32>, vector<16x64xf32> -> vector<16x64xf32>
    %c0_55 = arith.constant 0 : index
    %c0_56 = arith.constant 0 : index
    %c0_57 = arith.constant 0 : index
    %148 = vector.load %arg11[%c0_55, %c0_56, %c0_57] : memref<1x1x64xf32, #tpu.memory_space<vmem>>, vector<1x1x64xf32>
    %149 = vector.shape_cast %148 : vector<1x1x64xf32> to vector<1x64xf32>
    %150 = vector.broadcast %149 : vector<1x64xf32> to vector<16x64xf32>
    %151 = arith.addf %147, %150 : vector<16x64xf32>
    %cst_58 = arith.constant 5.000000e-01 : f32
    %152 = vector.broadcast %cst_58 : f32 to vector<16x64xf32>
    %153 = arith.mulf %152, %151 : vector<16x64xf32>
    %cst_59 = arith.constant 0.707106769 : f32
    %154 = vector.broadcast %cst_59 : f32 to vector<16x64xf32>
    %155 = arith.mulf %151, %154 : vector<16x64xf32>
    %156 = math.absf %155 : vector<16x64xf32>
    %cst_60 = arith.constant 0.327591091 : f32
    %157 = vector.broadcast %cst_60 : f32 to vector<16x64xf32>
    %158 = arith.mulf %157, %156 : vector<16x64xf32>
    %cst_61 = arith.constant 1.000000e+00 : f32
    %159 = vector.broadcast %cst_61 : f32 to vector<16x64xf32>
    %160 = arith.addf %159, %158 : vector<16x64xf32>
    %cst_62 = arith.constant 1.000000e+00 : f32
    %161 = vector.broadcast %cst_62 : f32 to vector<16x64xf32>
    %162 = arith.divf %161, %160 : vector<16x64xf32>
    %cst_63 = arith.constant 1.06140542 : f32
    %163 = vector.broadcast %cst_63 : f32 to vector<16x64xf32>
    %164 = arith.mulf %163, %162 : vector<16x64xf32>
    %cst_64 = arith.constant -1.45315206 : f32
    %165 = vector.broadcast %cst_64 : f32 to vector<16x64xf32>
    %166 = arith.addf %164, %165 : vector<16x64xf32>
    %167 = arith.mulf %166, %162 : vector<16x64xf32>
    %cst_65 = arith.constant 1.42141378 : f32
    %168 = vector.broadcast %cst_65 : f32 to vector<16x64xf32>
    %169 = arith.addf %167, %168 : vector<16x64xf32>
    %170 = arith.mulf %169, %162 : vector<16x64xf32>
    %cst_66 = arith.constant -0.284496725 : f32
    %171 = vector.broadcast %cst_66 : f32 to vector<16x64xf32>
    %172 = arith.addf %170, %171 : vector<16x64xf32>
    %173 = arith.mulf %172, %162 : vector<16x64xf32>
    %cst_67 = arith.constant 0.254829586 : f32
    %174 = vector.broadcast %cst_67 : f32 to vector<16x64xf32>
    %175 = arith.addf %173, %174 : vector<16x64xf32>
    %176 = arith.mulf %175, %162 : vector<16x64xf32>
    %cst_68 = arith.constant 0.000000e+00 : f32
    %177 = vector.broadcast %cst_68 : f32 to vector<16x64xf32>
    %178 = arith.subf %177, %156 : vector<16x64xf32>
    %179 = arith.mulf %178, %156 : vector<16x64xf32>
    %180 = math.exp %179 : vector<16x64xf32>
    %181 = arith.mulf %176, %180 : vector<16x64xf32>
    %cst_69 = arith.constant 1.000000e+00 : f32
    %182 = vector.broadcast %cst_69 : f32 to vector<16x64xf32>
    %183 = arith.subf %182, %181 : vector<16x64xf32>
    %cst_70 = arith.constant 0.000000e+00 : f32
    %184 = vector.broadcast %cst_70 : f32 to vector<16x64xf32>
    %185 = arith.cmpf olt, %155, %184 : vector<16x64xf32>
    %cst_71 = arith.constant 0.000000e+00 : f32
    %186 = vector.broadcast %cst_71 : f32 to vector<16x64xf32>
    %187 = arith.subf %186, %183 : vector<16x64xf32>
    %188 = arith.select %185, %187, %183 : vector<16x64xi1>, vector<16x64xf32>
    %cst_72 = arith.constant 1.000000e+00 : f32
    %189 = vector.broadcast %cst_72 : f32 to vector<16x64xf32>
    %190 = arith.addf %189, %188 : vector<16x64xf32>
    %191 = arith.mulf %153, %190 : vector<16x64xf32>
    %c0_73 = arith.constant 0 : index
    %c0_74 = arith.constant 0 : index
    %c0_75 = arith.constant 0 : index
    %192 = vector.load %arg12[%c0_73, %c0_74, %c0_75] : memref<1x64x32xf32, #tpu.memory_space<vmem>>, vector<1x64x32xf32>
    %193 = vector.shape_cast %192 : vector<1x64x32xf32> to vector<64x32xf32>
    %cst_76 = arith.constant dense<0.000000e+00> : vector<16x32xf32>
    %194 = tpu.matmul %191, %193, %cst_76 {dimension_numbers = #tpu.dot_dimension_numbers<[1], [0], [0], [1], [0, 0, 1, 1], [], []>} : vector<16x64xf32>, vector<64x32xf32>, vector<16x32xf32> -> vector<16x32xf32>
    %c0_77 = arith.constant 0 : index
    %c0_78 = arith.constant 0 : index
    %c0_79 = arith.constant 0 : index
    %195 = vector.load %arg13[%c0_77, %c0_78, %c0_79] : memref<1x1x32xf32, #tpu.memory_space<vmem>>, vector<1x1x32xf32>
    %196 = vector.shape_cast %195 : vector<1x1x32xf32> to vector<1x32xf32>
    %197 = vector.broadcast %196 : vector<1x32xf32> to vector<16x32xf32>
    %198 = arith.addf %194, %197 : vector<16x32xf32>
    %199 = arith.addf %118, %198 : vector<16x32xf32>
    %200 = vector.shape_cast %199 : vector<16x32xf32> to vector<2x8x32xf32>
    %c0_80 = arith.constant 0 : index
    %c0_81 = arith.constant 0 : index
    %c0_82 = arith.constant 0 : index
    %201 = vector.load %arg14[%c0_80, %c0_81, %c0_82] : memref<2x8x32xf32, #tpu.memory_space<vmem>>, vector<2x8x32xf32>
    tpu.vector_store %arg14[%c0_80, %c0_81, %c0_82], %200 {strides = array<i32>} : memref<2x8x32xf32, #tpu.memory_space<vmem>>, vector<2x8x32xf32>,
    return
  }
  func.func @transform_0(%arg0: i32, %arg1: i32) -> (i32, i32, i32) {
    %c0_i32 = arith.constant 0 : i32
    %c0_i32_0 = arith.constant 0 : i32
    %c0_i32_1 = arith.constant 0 : i32
    return %arg0, %c0_i32, %c0_i32_0 : i32, i32, i32
  }
  func.func @transform_1(%arg0: i32, %arg1: i32) -> (i32, i32, i32) {
    %c0_i32 = arith.constant 0 : i32
    %c0_i32_0 = arith.constant 0 : i32
    %c0_i32_1 = arith.constant 0 : i32
    return %arg1, %c0_i32, %c0_i32_0 : i32, i32, i32
  }
  func.func @transform_2(%arg0: i32, %arg1: i32) -> (i32, i32, i32) {
    %c0_i32 = arith.constant 0 : i32
    %c0_i32_0 = arith.constant 0 : i32
    %c0_i32_1 = arith.constant 0 : i32
    return %arg1, %c0_i32, %c0_i32_0 : i32, i32, i32
  }
  func.func @transform_3(%arg0: i32, %arg1: i32) -> (i32, i32, i32) {
    %c0_i32 = arith.constant 0 : i32
    %c0_i32_0 = arith.constant 0 : i32
    %c0_i32_1 = arith.constant 0 : i32
    return %arg1, %c0_i32, %c0_i32_0 : i32, i32, i32
  }
  func.func @transform_4(%arg0: i32, %arg1: i32) -> (i32, i32, i32) {
    %c0_i32 = arith.constant 0 : i32
    %c0_i32_0 = arith.constant 0 : i32
    %c0_i32_1 = arith.constant 0 : i32
    return %arg1, %c0_i32, %c0_i32_0 : i32, i32, i32
  }
  func.func @transform_5(%arg0: i32, %arg1: i32) -> (i32, i32, i32) {
    %c0_i32 = arith.constant 0 : i32
    %c0_i32_0 = arith.constant 0 : i32
    %c0_i32_1 = arith.constant 0 : i32
    return %arg1, %c0_i32, %c0_i32_0 : i32, i32, i32
  }
  func.func @transform_6(%arg0: i32, %arg1: i32) -> (i32, i32, i32) {
    %c0_i32 = arith.constant 0 : i32
    %c0_i32_0 = arith.constant 0 : i32
    %c0_i32_1 = arith.constant 0 : i32
    return %arg1, %c0_i32, %c0_i32_0 : i32, i32, i32
  }
  func.func @transform_7(%arg0: i32, %arg1: i32) -> (i32, i32, i32) {
    %c0_i32 = arith.constant 0 : i32
    %c0_i32_0 = arith.constant 0 : i32
    %c0_i32_1 = arith.constant 0 : i32
    return %arg1, %c0_i32, %c0_i32_0 : i32, i32, i32
  }
  func.func @transform_8(%arg0: i32, %arg1: i32) -> (i32, i32, i32) {
    %c0_i32 = arith.constant 0 : i32
    %c0_i32_0 = arith.constant 0 : i32
    %c0_i32_1 = arith.constant 0 : i32
    return %arg1, %c0_i32, %c0_i32_0 : i32, i32, i32
  }
  func.func @transform_9(%arg0: i32, %arg1: i32) -> (i32, i32, i32) {
    %c0_i32 = arith.constant 0 : i32
    %c0_i32_0 = arith.constant 0 : i32
    %c0_i32_1 = arith.constant 0 : i32
    return %arg1, %c0_i32, %c0_i32_0 : i32, i32, i32
  }
  func.func @transform_10(%arg0: i32, %arg1: i32) -> (i32, i32, i32) {
    %c0_i32 = arith.constant 0 : i32
    %c0_i32_0 = arith.constant 0 : i32
    %c0_i32_1 = arith.constant 0 : i32
    return %arg1, %c0_i32, %c0_i32_0 : i32, i32, i32
  }
  func.func @transform_11(%arg0: i32, %arg1: i32) -> (i32, i32, i32) {
    %c0_i32 = arith.constant 0 : i32
    %c0_i32_0 = arith.constant 0 : i32
    %c0_i32_1 = arith.constant 0 : i32
    return %arg1, %c0_i32, %c0_i32_0 : i32, i32, i32
  }
  func.func @transform_12(%arg0: i32, %arg1: i32) -> (i32, i32, i32) {
    %c0_i32 = arith.constant 0 : i32
    %c0_i32_0 = arith.constant 0 : i32
    %c0_i32_1 = arith.constant 0 : i32
    return %arg0, %c0_i32, %c0_i32_0 : i32, i32, i32
  }
}

</mosaic_0001>

<bundles_post_ra>
// kernel: tpu_custom_call.1
= control target key start
LH: loop header
LB: loop body
LE: loop exit
PB: predicated region body
PF: predicated region fallthrough
CT: control target
= control target key end

     0   :  { %s3712_s0 = inlined_call_operand.hbm [shape: f32[2,8,32], index: 0, kind: input, shape index: {}]   ;;  %s3713_s1 = inlined_call_operand.hbm [shape: f32[2,1,32], index: 1, kind: input, shape index: {}]   ;;  %s3714_s2 = inlined_call_operand.vmem [shape: f32[2,1,32], index: 2, kind: input, shape index: {}]   ;;  %s3715_s3 = inlined_call_operand.vmem [shape: f32[2,32,96], index: 3, kind: input, shape index: {}]   ;;  %s3716_s4 = inlined_call_operand.vmem [shape: f32[2,32,32], index: 4, kind: input, shape index: {}]   ;;  %s3717_s5 = inlined_call_operand.vmem [shape: f32[2,1,32], index: 5, kind: input, shape index: {}]   ;;  %s3718_s6 = inlined_call_operand.vmem [shape: f32[2,1,32], index: 6, kind: input, shape index: {}]   ;;  %s3719_s7 = inlined_call_operand.vmem [shape: f32[2,1,32], index: 7, kind: input, shape index: {}]   ;;  %s3720_s8 = inlined_call_operand.vmem [shape: f32[2,32,64], index: 8, kind: input, shape index: {}]   ;;  %s3721_s9 = inlined_call_operand.vmem [shape: f32[2,1,64], index: 9, kind: input, shape index: {}]   ;;  %s3722_s10 = inlined_call_operand.vmem [shape: f32[2,64,32], index: 10, kind: input, shape index: {}]   ;;  %s3723_s11 = inlined_call_operand.vmem [shape: f32[2,1,32], index: 11, kind: input, shape index: {}]   ;;  %s3724_s12 = inlined_call_operand.hbm [shape: f32[2,8,32], index: 12, kind: output, shape index: {}]  }
   0x1   :  { %3729 = sst [smem:[#allocation15_spill]] %s3712_s0 }
   0x2   :  { %3730 = sst [smem:[#allocation16_spill]] %s3713_s1 }
   0x3   :  { %3731 = sst [smem:[#allocation17_spill]] %s3715_s3 }
   0x4   :  { %3732 = sst [smem:[#allocation18_spill]] %s3716_s4 }
   0x5   :  { %3733 = sst [smem:[#allocation19_spill]] %s3722_s10 }
   0x6   :  { %3734 = sst [smem:[#allocation20_spill]] %s3723_s11 }
   0x7   :  { %3735 = sst [smem:[#allocation21_spill]] %s3724_s12 }
   0x8   :  { %17 = vsyncpa [#allocation3], 0 }
   0x9   :  { %18 = vsyncpa [#allocation6], 0 }
   0xa   :  { %20 = vsyncpa [#allocation6 + $0x1], 0 }
   0xb   :  { %21 = vsyncpa [#allocation4], 0  ;;  %s3304_s21 = smov 0   ;;  %s3306_s22 = smov 0  }
   0xc   :  { %s3308_s23 = smov 0   ;;  %s3310_s24 = smov 0  }
   0xd   :  { %s3312_s25 = smov 0   ;;  %s3314_s26 = smov 0  }
   0xe LB: > { %3736 = sst [smem:[#allocation11_spill]] %s3203_s23  ;;  %s3725_s27 = sadd.s32 4294967295, %s3215_s26   ;;  %s3215_s26 = sphi %s3314_s26, %s27_s26   ;;  %s3211_s25 = sphi %s3312_s25, %s3761_s25   ;;  %s3207_s24 = sphi %s3310_s24, %s3760_s24   ;;  %s3203_s23 = sphi %s3308_s23, %s3759_s23   ;;  %s3199_s22 = sphi %s3306_s22, %s3763_s22   ;;  %s3195_s21 = sphi %s3304_s21, %s3762_s21  }
   0xf   : > { %3737 = sst [smem:[#allocation12_spill]] %s3211_s25  ;;  %p85_p0 = scmp.ne.s32.totalorder %s3199_s22, %s3195_s21 }
  0x10   : > { %p3336_p1 = scmp.eq.s32.totalorder %s3725_s27, 0  ;;  %p2685_p2 = scmp.ge.s32.totalorder %s3215_s26, 1 }
  0x11   : > { %p382_p3 = scmp.lt.s32.totalorder %s3215_s26, 3  ;;  %s3217_s13 = smov [#allocation2]  }
  0x12   : > { %p3344_p4 = por %p3336_p1, %p85_p0  ;;  %s397_s14 = sshll.u32 %s3217_s13, 4  ;;  %s398_s14 = int_to_ptr.vmem [resolvable:$true] %s397_s14 }
  0x13   : > { %p3348_p5 = pnand %p2685_p2, %p382_p3  ;;  %s36_s16 = sadd.s32 1, %s3211_s25 }
  0x14   : > { %s3090_s17 = scalar_lea.vmem %s398_s14, 256  ;;  %p3098_p12 = scmp.lt.s32.totalorder %s398_s14, %s398_s14 }
  0x15   : > { %p2949_p6 = pneg %p3348_p5  ;;  %p3091_p9 = scmp.ne.s32.totalorder %s398_s14, %s3090_s17 }
  0x16   : > { %p3099_p13 = scmp.lt.s32.totalorder %s3090_s17, %s3090_s17 }
  0x17   : > { %p3356_p7 = pnand %p2949_p6, %p3336_p1 }
  0x18   : > { %p3100_p0 = por %p3099_p13, %p3098_p12 }
  0x19   : > { %p3081_p8 = pneg %p3356_p7 }
  0x1b   : > { %p3093_p10 = pnand %p3091_p9, %p3081_p8 }
  0x1d   : > { %p3094_p11 = pneg %p3093_p10 }
  0x1f   : > { %p3101_p2 = pnand %p3100_p0, %p3094_p11 }
  0x21   : > { %3104 = shalt.err (!%p3101_p2)
}
  0x22   : > { %s3218_s18 = smov 128   ;;  %s3219_s19 = smov 8  }
  0x23   : > { %s3742_s0 = sld [smem:[#allocation15_spill]]  ;;  %p37_p3 = scmp.ge.s32.totalorder %s36_s16, 2 }
  0x24   : > { %s72_s13 = sadd.s32 1, %s3203_s23  ;;  %p79_p6 = scmp.ne.s32.totalorder %s3203_s23, %s3199_s22 }
  0x25   : > { %p80_p8 = scmp.eq.s32.totalorder %s3215_s26, 0  ;;  %s3765_s16 = smov (%p37_p3, %s36_s16), 0 }
  0x26   : > { %3743 = sst [smem:[#allocation13_spill]] %s3765_s16  ;;  %p2958_p10 = scmp.lt.s32.totalorder %s3215_s26, 2 }
  0x27   : > { %p81_p9 = por %p80_p8, %p79_p6  ;;  %s69_s17 = ssub.s32 %s3211_s25, %s3765_s16 }
  0x28   : > { %s411_s27 = sand.u32 1, %s3203_s23   ;;  %p70_p11 = scmp.eq.s32.totalorder %s69_s17, 0 }
  0x29   : > { %2952 = dma.hbm_to_vmem [thread:$0]  (!%p3356_p7), %s3742_s0, 256, %s398_s14, [#allocation3], %s3218_s18, %s3218_s18, %s3219_s19  }
  0x2a   : > { %s2688_s12 = sshll.u32 %s3211_s25, 4  ;;  %s3745_s1 = sld [smem:[#allocation16_spill]] }
  0x2b   : > { %s3380_s11 = scalar_select %p70_p11, %s3203_s23, %s72_s13  }
  0x2c   : > { %s414_s14 = scalar_lea.vmem [#allocation5], %s411_s27  ;;  %p3385_p7 = pnand %p2958_p10, %p81_p9 }
  0x2d   : > { %3744 = sst [smem:[#allocation14_spill]] %s3380_s11  ;;  %s421_s18 = sshll.u32 %s414_s14, 4  ;;  %s422_s18 = int_to_ptr.vmem [resolvable:$true] %s421_s18 }
  0x2e   : > { %s412_s21 = scalar_lea.sflag [#allocation6], %s411_s27  ;;  %p3107_p12 = pneg %p3385_p7 }
  0x2f   : > { %s3118_s0 = scalar_lea.vmem %s422_s18, 16  ;;  %s3220_s13 = smov [#allocation5]  }
  0x30   : > { %s419_s20 = scalar_lea.hbm %s3745_s1, %s2688_s12  ;;  %p3119_p13 = scmp.ne.s32.totalorder %s422_s18, %s3118_s0 }
  0x31   : > { %s3123_s17 = sshll.u32 %s3220_s13, 4  ;;  %s3124_s17 = int_to_ptr.vmem [resolvable:$false] %s3123_s17 }
  0x32   : > { %p3121_p0 = pnand %p3119_p13, %p3107_p12  ;;  %s3125_s10 = scalar_lea.vmem %s3124_s17, 32 }
  0x33   : > { %p3126_p3 = scmp.lt.s32.totalorder %s422_s18, %s3124_s17  ;;  %p3127_p6 = scmp.lt.s32.totalorder %s3125_s10, %s3118_s0 }
  0x34   : > { %p3122_p2 = pneg %p3121_p0 }
  0x35   : > { %p3128_p8 = por %p3127_p6, %p3126_p3 }
  0x37   : > { %p3129_p11 = pnand %p3128_p8, %p3122_p2 }
  0x39   : > { %3132 = shalt.err (!%p3129_p11)
}
  0x3a   : > { %2956 = dma.hbm_to_vmem [thread:$0]  (!%p3385_p7), %s419_s20, 16, %s422_s18, %s412_s21  }
  0x3b   : > { %498 = sbr.rel (%p3348_p5) target bundleno = 4030 (0xfbe), region = 68 }
  0x40   : > { %3182 = dma.done.wait (%p3336_p1), [#allocation3], 256  }
  0x41   : > { %3184 = vsyncadd (%p3336_p1), [#allocation3], 4294967040  ;;  %s504_s12 = sand.u32 1, %s3199_s22  }
  0x42   : > { %s505_s27 = scalar_lea.sflag [#allocation6], %s504_s12  ;;  %s3400_s0 = scalar_lea.vmem [#allocation5], %s504_s12 }
  0x43   : > { %3186 = dma.done.wait (%p3344_p4), %s505_s27, 16  }
  0x44   : > { %3188 = vsyncadd (%p3344_p4), %s505_s27, 4294967280  ;;  %p581_p5 = scmp.lt.s32.totalorder %s3207_s24, 1  ;;  %s3747_s3 = sld [smem:[#allocation17_spill]] }
  0x45   : > { %s3748_s4 = sld [smem:[#allocation18_spill]]  ;;  %p2699_p1 = scmp.ne.s32.totalorder %s3207_s24, 0 }
  0x46   : > { %s3408_s30 = scalar_select %p581_p5, %s3207_s24, 1 }
  0x47   : > { %s3749_s27 = sld [smem:[#allocation19_spill]] }
  0x48   : > { %s2743_s14 = sshll.u32 %s3408_s30, 5  ;;  %s602_s25 = scalar_lea.vmem %s3719_s7, %s3408_s30 }
  0x49   : > { %s2746_s11 = sshll.u32 %s3408_s30, 6  ;;  %s3750_s1 = sld [smem:[#allocation20_spill]] }
  0x4a   : > { %s3418_s19 = scalar_lea.vmem %s3747_s3, %s2743_s14  ;;  %s3440_s3 = scalar_lea.vmem %s3720_s8, %s2743_s14 }
  0x4b   : > { %s3423_s17 = scalar_lea.vmem %s3748_s4, %s2743_s14  ;;  %s610_s4 = scalar_lea.vmem %s3721_s9, %s3408_s30 }
  0x4c   : > { %623 = sbr.rel (%p2699_p1) target bundleno = 83 (0x53), region = 80 }
  0x4d   : > { %s3450_s23 = scalar_lea.vmem %s3749_s27, %s2746_s11 }
  0x4f   : > { %s618_s16 = scalar_lea.vmem %s3750_s1, %s3408_s30 }
  0x51   : > { %v624_v0 = vld [vmem:[#allocation2] sm:$0xff]  ;;  %vm626_vm0 = vcmask 261120   ;;  %v625_v1 = vld [vmem:[#allocation2 + $0x8] sm:$0xff] }
  0x52   : > { %627 = vst.msk [vmem:[#allocation7] sm:$0xff] %vm626_vm0, %v624_v0  ;;  %628 = vst.msk [vmem:[#allocation7 + $0x8] sm:$0xff] %vm626_vm0, %v625_v1 }
  0x53 PF: > { %vm631_vm1 = vcmask 261120   ;;  %v680_v16 = vld [vmem:[%s3418_s19 + $0x18] sm:$0xff]  ;;  %v679_v17 = vld [vmem:[%s3418_s19 + $0x10] sm:$0xff]  ;;  %v678_v18 = vld [vmem:[%s3418_s19 + $0x8] sm:$0xff]  ;;  %s3751_s24 = scalar_lea.vmem %s3714_s2, %s3408_s30  ;;  %v3221_v36 = vmov 0.0   ;;  %vm3222_vm2 = vmmov 0  }
  0x54   : > { %2807 = vmatprep.subr.mxu1 %v680_v16  ;;  %v677_v19 = vld [vmem:[%s3418_s19] sm:$0xff]  ;;  %2828 = vmatprep.subr.mxu0 %v3221_v36  ;;  %vm765_vm3 = vcmask 64512   ;;  %s3224_s20 = smov 64   ;;  %s3225_s14 = smov 88   ;;  %vm2110_vm4 = vcmask 195584   ;;  %vm2107_vm5 = vcmask 130048  }
  0x55   : > { %2808 = vmatpush3.msra.mxu1 %v680_v16  ;;  %v2700_v27 = vld [vmem:[%s3400_s0] ss:$0 sm:$0xff]  ;;  %2830 = vmatprep.mubr.msk.f32.mxu0 %vm3222_vm2, %v3221_v36  ;;  %s3223_s0 = smov 96   ;;  %s3226_s19 = smov 120   ;;  %vm2412_vm8 = vcmask 523264  }
  0x56   : > { %2809 = vmatprep.subr.mxu1 %v679_v17  ;;  %v2701_v29 = vld [vmem:[%s3751_s24] ss:$0 sm:$0xff]  ;;  %s3227_s27 = smov 56   ;;  %s3228_s29 = smov 80  }
  0x57   : > { %2810 = vmatpush3.msra.mxu1 %v679_v17  ;;  %s3229_s18 = smov 112   ;;  %s3230_s21 = smov 48  }
  0x58   : > { %2811 = vmatprep.subr.mxu1 %v678_v18  ;;  %s3231_s13 = smov 72   ;;  %s3232_s10 = smov 104  }
  0x59   : > { %v3457_v2 = vld [vmem:[#allocation7] sm:$0xff]  ;;  %v3459_v3 = vld [vmem:[#allocation7 + $0x8] sm:$0xff]  ;;  %2812 = vmatpush3.msra.mxu1 %v678_v18  ;;  %s3233_s12 = smov 40   ;;  %s3234_s15 = smov 8  }
  0x5a   : > { %v632_v4 = vsel %vm631_vm1, %v3457_v2, 0.0  ;;  %v635_v5 = vsel %vm631_vm1, %v3459_v3, 0.0  ;;  %2813 = vmatprep.subr.mxu1 %v677_v19  ;;  %s3235_s28 = smov 16   ;;  %s3236_s1 = smov 24  }
  0x5b   : > { %633 = vadd.xlane.f32.xlu0 %v632_v4  ;;  %2814 = vmatpush3.msra.mxu1 %v677_v19  ;;  %s3752_s24 = scalar_lea.vmem %s3717_s5, %s3408_s30 }
  0x5c   : > { %2818 = vmatprep.subr.mxu1 %v3221_v36 }
  0x5f   : > { %636 = vadd.xlane.f32.xlu0 %v635_v5 }
  0xe4   : > { %v634_v6 = vpop.xlane.xlu0 %633 }
  0xe5   : > { %v639_v7 = vmul.f32 0.03125, %v634_v6 }
  0xe7   : > { %v641_v8 = vsub.f32 %v3457_v2, %v639_v7 }
  0xe8   : > { %v637_v9 = vpop.xlane.xlu0 %636 }
  0xe9   : > { %v640_v10 = vmul.f32 0.03125, %v637_v9  ;;  %v643_v11 = vmul.f32 %v641_v8, %v641_v8 }
  0xeb   : > { %v642_v12 = vsub.f32 %v3459_v3, %v640_v10  ;;  %v645_v13 = vsel %vm631_vm1, %v643_v11, 0.0 }
  0xec   : > { %646 = vadd.xlane.f32.xlu1 %v645_v13 }
  0xed   : > { %v644_v14 = vmul.f32 %v642_v12, %v642_v12 }
  0xef   : > { %v648_v15 = vsel %vm631_vm1, %v644_v14, 0.0 }
  0xf0   : > { %649 = vadd.xlane.f32.xlu1 %v648_v15 }
 0x175   : > { %v647_v20 = vpop.xlane.xlu1 %646 }
 0x176   : > { %v651_v21 = vmul.f32 0.03125, %v647_v20 }
 0x178   : > { %v653_v22 = vadd.f32 1e-05, %v651_v21 }
 0x179   : > { %v650_v23 = vpop.xlane.xlu1 %649 }
 0x17a   : > { %3031 = vrsqrt.f32 %v653_v22  ;;  %v652_v24 = vmul.f32 0.03125, %v650_v23 }
 0x17c   : > { %v654_v25 = vadd.f32 1e-05, %v652_v24 }
 0x17e   : > { %3033 = vrsqrt.f32 %v654_v25 }
 0x187   : > { %v3032_v26 = vpop.eup %3031 }
 0x188   : > { %v657_v28 = vmul.f32 %v3032_v26, %v641_v8 }
 0x18a   : > { %v666_v30 = vmul.f32 %v2700_v27, %v657_v28 }
 0x18b   : > { %v3034_v31 = vpop.eup %3033 }
 0x18c   : > { %v658_v32 = vmul.f32 %v3034_v31, %v642_v12  ;;  %v675_v33 = vadd.f32 %v2701_v29, %v666_v30 }
 0x18e   : > { %v667_v34 = vmul.f32 %v2700_v27, %v658_v32  ;;  %2815 = vmatprep.mubr.msk.f32.mxu1 %vm631_vm1, %v675_v33 }
 0x190   : > { %v676_v35 = vadd.f32 %v2701_v29, %v667_v34 }
 0x192   : > { %2816 = vmatmul.mubr.msk.f32.vlgmr.msra.gmra.mxu1 %vm631_vm1, %v676_v35 }
 0x193   : > { %2820 = vmatprep.mubr.msk.f32.mxu1 %vm3222_vm2, %v3221_v36 }
 0x252   : > { %v3487_v37 = vpop.f32.mrf.mxu1 }
 0x253   : > { %841 = vrot.lane.b32.xlu1 %v3487_v37, %s3223_s0 }
 0x254   : > { %v3490_v38 = vpop.f32.mrf.mxu1 }
 0x255   : > { %763 = vrot.lane.b32.xlu0 %v3490_v38, %s3223_s0 }
 0x2c5   : > { %v842_v40 = vpop.permute.xlu1 %841 }
 0x2c7   : > { %v764_v39 = vpop.permute.xlu0 %763 }
 0x2c8   : > { %2819 = vmatpush3.xpose.msk.msra.mxu1 %vm765_vm3, %v764_v39 }
 0x2c9   : > { %2823 = vmatprep.subr.mxu1 %v3221_v36 }
 0x2cb   : > { %2821 = vmatmul.mubr.msk.f32.vlgmr.msra.gmra.mxu1 %vm765_vm3, %v3490_v38 }
 0x2cc   : > { %2824 = vmatpush3.xpose.msk.msra.mxu1 %vm765_vm3, %v842_v40  ;;  %2825 = vmatprep.mubr.msk.f32.mxu1 %vm3222_vm2, %v3221_v36 }
 0x2cd   : > { %2833 = vmatprep.subr.mxu1 %v3221_v36 }
 0x2cf   : > { %2826 = vmatmul.mubr.msk.f32.vlgmr.msra.gmra.mxu1 %vm765_vm3, %v3487_v37 }
 0x2d0   : > { %2835 = vmatprep.mubr.msk.f32.mxu1 %vm3222_vm2, %v3221_v36 }
 0x38b   : > { %v836_v41 = vpop.f32.mrf.mxu1 }
 0x38c   : > { %v917_v42 = vsel %vm765_vm3, %v836_v41, -inf }
 0x38d   : > { %918 = vmax.xlane.f32.xlu1 %v917_v42  ;;  %v2822_v43 = vpop.f32.mrf.mxu1 }
 0x38f   : > { %v913_v44 = vpop.f32.mrf.mxu1 }
 0x390   : > { %v920_v45 = vsel %vm765_vm3, %v913_v44, -inf }
 0x391   : > { %921 = vmax.xlane.f32.xlu0 %v920_v45  ;;  %v2827_v46 = vpop.f32.mrf.mxu1 }
 0x39e   : > { %1015 = vrot.lane.b32.xlu1 %v3487_v37, %s3224_s20 }
 0x3a2   : > { %1093 = vrot.lane.b32.xlu1 %v3490_v38, %s3225_s14 }
 0x3a6   : > { %1171 = vrot.lane.b32.xlu1 %v3487_v37, %s3225_s14  ;;  %s3753_s14 = scalar_lea.vmem %s3718_s6, %s3408_s30 }
 0x416   : > { %v919_v47 = vpop.xlane.xlu1 %918 }
 0x417   : > { %v923_v48 = vsub.f32 %v836_v41, %v919_v47 }
 0x419   : > { %v925_v49 = vmul.f32 1.442695, %v923_v48 }
 0x41a   : > { %v1016_v50 = vpop.permute.xlu1 %1015  ;;  %v922_v51 = vpop.xlane.xlu0 %921 }
 0x41b   : > { %3035 = vpow2.f32 %v925_v49  ;;  %v924_v52 = vsub.f32 %v913_v44, %v922_v51  ;;  %2834 = vmatpush3.msra.mxu1 %v1016_v50 }
 0x41c   : > { %2843 = vmatprep.subr.mxu1 %v3221_v36 }
 0x41d   : > { %v927_v53 = vmul.f32 1.442695, %v924_v52 }
 0x41e   : > { %v1094_v58 = vpop.permute.xlu1 %1093 }
 0x41f   : > { %3037 = vpow2.f32 %v927_v53 }
 0x422   : > { %v1172_v59 = vpop.permute.xlu1 %1171 }
 0x428   : > { %v3036_v54 = vpop.eup %3035 }
 0x429   : > { %v929_v55 = vsel %vm765_vm3, %v3036_v54, 0.0 }
 0x42a   : > { %930 = vadd.xlane.f32.xlu0 %v929_v55 }
 0x42c   : > { %v3038_v56 = vpop.eup %3037 }
 0x42d   : > { %v932_v57 = vsel %vm765_vm3, %v3038_v56, 0.0 }
 0x42e   : > { %933 = vadd.xlane.f32.xlu1 %v932_v57 }
 0x43f   : > { %1169 = vrot.lane.b32.xlu1 %v3487_v37, %s3226_s19 }
 0x440   : > { %939 = vrot.lane.b32.xlu0 %v3490_v38, %s3224_s20 }
 0x444   : > { %1091 = vrot.lane.b32.xlu0 %v3490_v38, %s3226_s19 }
 0x4b3   : > { %v931_v60 = vpop.xlane.xlu0 %930 }
 0x4b4   : > { %3039 = vrcp.f32 %v931_v60 }
 0x4b7   : > { %v934_v61 = vpop.xlane.xlu1 %933  ;;  %v940_v62 = vpop.permute.xlu0 %939 }
 0x4b8   : > { %3041 = vrcp.f32 %v934_v61  ;;  %2829 = vmatpush3.msra.mxu0 %v940_v62 }
 0x4b9   : > { %2838 = vmatprep.subr.mxu0 %v3221_v36 }
 0x4bb   : > { %v1092_v5 = vpop.permute.xlu0 %1091  ;;  %v1170_v6 = vpop.permute.xlu1 %1169 }
 0x4c1   : > { %v3040_v63 = vpop.eup %3039 }
 0x4c2   : > { %v937_v0 = vmul.f32 %v3040_v63, %v3036_v54 }
 0x4c4   : > { %2831 = vmatmul.mubr.msk.f32.vlgmr.msra.gmra.mxu0 %vm765_vm3, %v937_v0 }
 0x4c5   : > { %v3042_v1 = vpop.eup %3041  ;;  %2839 = vmatpush3.xpose.msk.msra.mxu0 %vm765_vm3, %v1094_v58  ;;  %2840 = vmatprep.mubr.msk.f32.mxu0 %vm3222_vm2, %v3221_v36 }
 0x4c6   : > { %v938_v4 = vmul.f32 %v3042_v1, %v3038_v56  ;;  %2848 = vmatprep.subr.mxu0 %v3221_v36 }
 0x4c8   : > { %2836 = vmatmul.mubr.msk.f32.vlgmr.msra.gmra.mxu1 %vm765_vm3, %v938_v4  ;;  %2841 = vmatmul.mubr.msk.f32.vlgmr.msra.gmra.mxu0 %vm765_vm3, %v1092_v5 }
 0x4c9   : > { %2844 = vmatpush3.xpose.msk.msra.mxu1 %vm765_vm3, %v1172_v59  ;;  %2845 = vmatprep.mubr.msk.f32.mxu1 %vm3222_vm2, %v3221_v36 }
 0x4ca   : > { %2853 = vmatprep.subr.mxu1 %v3221_v36  ;;  %2850 = vmatprep.mubr.msk.f32.mxu0 %vm3222_vm2, %v3221_v36 }
 0x4cc   : > { %2846 = vmatmul.mubr.msk.f32.vlgmr.msra.gmra.mxu1 %vm765_vm3, %v1170_v6 }
 0x4cd   : > { %2855 = vmatprep.mubr.msk.f32.mxu1 %vm3222_vm2, %v3221_v36 }
 0x584   : > { %v3533_v7 = vpop.f32.mrf.mxu0 }
 0x586   : > { %v2832_v8 = vpop.f32.mrf.mxu0 }
 0x588   : > { %v3535_v9 = vpop.f32.mrf.mxu1  ;;  %v1165_v10 = vpop.f32.mrf.mxu0 }
 0x589   : > { %v1247_v11 = vsel %vm765_vm3, %v1165_v10, -inf }
 0x58a   : > { %1248 = vmax.xlane.f32.xlu0 %v1247_v11  ;;  %v2837_v12 = vpop.f32.mrf.mxu1  ;;  %v2842_v13 = vpop.f32.mrf.mxu0 }
 0x58c   : > { %v1243_v14 = vpop.f32.mrf.mxu1 }
 0x58d   : > { %v1250_v15 = vsel %vm765_vm3, %v1243_v14, -inf }
 0x58e   : > { %1251 = vmax.xlane.f32.xlu1 %v1250_v15  ;;  %v2847_v16 = vpop.f32.mrf.mxu1 }
 0x59f   : > { %1345 = vrot.lane.b32.xlu1 %v3487_v37, %s3227_s27 }
 0x5a0   : > { %1269 = vrot.lane.b32.xlu0 %v3490_v38, %s3227_s27 }
 0x5a3   : > { %1423 = vrot.lane.b32.xlu1 %v3490_v38, %s3228_s29 }
 0x5a7   : > { %1501 = vrot.lane.b32.xlu1 %v3487_v37, %s3228_s29 }
 0x5ab   : > { %1499 = vrot.lane.b32.xlu1 %v3487_v37, %s3229_s18 }
 0x613   : > { %v1249_v17 = vpop.xlane.xlu0 %1248 }
 0x614   : > { %v1253_v18 = vsub.f32 %v1165_v10, %v1249_v17 }
 0x616   : > { %v1255_v19 = vmul.f32 1.442695, %v1253_v18 }
 0x617   : > { %v1270_v20 = vpop.permute.xlu0 %1269  ;;  %v1252_v21 = vpop.xlane.xlu1 %1251 }
 0x618   : > { %3043 = vpow2.f32 %v1255_v19  ;;  %v1254_v22 = vsub.f32 %v1243_v14, %v1252_v21  ;;  %2849 = vmatpush3.msra.mxu0 %v1270_v20 }
 0x619   : > { %2858 = vmatprep.subr.mxu0 %v3221_v36 }
 0x61a   : > { %v1257_v23 = vmul.f32 1.442695, %v1254_v22 }
 0x61b   : > { %v1346_v24 = vpop.permute.xlu1 %1345 }
 0x61c   : > { %3045 = vpow2.f32 %v1257_v23  ;;  %2854 = vmatpush3.msra.mxu1 %v1346_v24 }
 0x61d   : > { %2863 = vmatprep.subr.mxu1 %v3221_v36 }
 0x61f   : > { %v1424_v31 = vpop.permute.xlu1 %1423 }
 0x623   : > { %v1502_v35 = vpop.permute.xlu1 %1501 }
 0x625   : > { %v3044_v25 = vpop.eup %3043 }
 0x626   : > { %v1259_v26 = vsel %vm765_vm3, %v3044_v25, 0.0 }
 0x627   : > { %1260 = vadd.xlane.f32.xlu0 %v1259_v26  ;;  %v1500_v41 = vpop.permute.xlu1 %1499 }
 0x629   : > { %v3046_v27 = vpop.eup %3045 }
 0x62a   : > { %v1262_v28 = vsel %vm765_vm3, %v3046_v27, 0.0 }
 0x62b   : > { %1263 = vadd.xlane.f32.xlu0 %v1262_v28 }
 0x641   : > { %1421 = vrot.lane.b32.xlu0 %v3490_v38, %s3229_s18  ;;  %s3237_s18 = smov [#allocation7]  }
 0x6b0   : > { %v1261_v29 = vpop.xlane.xlu0 %1260 }
 0x6b1   : > { %3047 = vrcp.f32 %v1261_v29 }
 0x6b4   : > { %v1264_v30 = vpop.xlane.xlu0 %1263 }
 0x6b5   : > { %3049 = vrcp.f32 %v1264_v30 }
 0x6b8   : > { %v1422_v40 = vpop.permute.xlu0 %1421 }
 0x6be   : > { %v3048_v32 = vpop.eup %3047 }
 0x6bf   : > { %v1267_v33 = vmul.f32 %v3048_v32, %v3044_v25 }
 0x6c1   : > { %2851 = vmatmul.mubr.msk.f32.vlgmr.msra.gmra.mxu0 %vm765_vm3, %v1267_v33 }
 0x6c2   : > { %v3050_v34 = vpop.eup %3049  ;;  %2859 = vmatpush3.xpose.msk.msra.mxu0 %vm765_vm3, %v1424_v31  ;;  %2860 = vmatprep.mubr.msk.f32.mxu0 %vm3222_vm2, %v3221_v36 }
 0x6c3   : > { %v1268_v39 = vmul.f32 %v3050_v34, %v3046_v27  ;;  %2868 = vmatprep.subr.mxu0 %v3221_v36 }
 0x6c5   : > { %2856 = vmatmul.mubr.msk.f32.vlgmr.msra.gmra.mxu1 %vm765_vm3, %v1268_v39  ;;  %2861 = vmatmul.mubr.msk.f32.vlgmr.msra.gmra.mxu0 %vm765_vm3, %v1422_v40 }
 0x6c6   : > { %2864 = vmatpush3.xpose.msk.msra.mxu1 %vm765_vm3, %v1502_v35  ;;  %2865 = vmatprep.mubr.msk.f32.mxu1 %vm3222_vm2, %v3221_v36 }
 0x6c7   : > { %2873 = vmatprep.subr.mxu1 %v3221_v36  ;;  %2870 = vmatprep.mubr.msk.f32.mxu0 %vm3222_vm2, %v3221_v36 }
 0x6c9   : > { %2866 = vmatmul.mubr.msk.f32.vlgmr.msra.gmra.mxu1 %vm765_vm3, %v1500_v41 }
 0x6ca   : > { %2875 = vmatprep.mubr.msk.f32.mxu1 %vm3222_vm2, %v3221_v36 }
 0x781   : > { %v3565_v42 = vpop.f32.mrf.mxu0 }
 0x783   : > { %v2852_v43 = vpop.f32.mrf.mxu0 }
 0x784   : > { %v2116_v43 = vld [vmem:[%s3423_s17 + $0x18] sm:$0xff] }
 0x785   : > { %v3567_v44 = vpop.f32.mrf.mxu1  ;;  %v1495_v45 = vpop.f32.mrf.mxu0 }
 0x786   : > { %v1577_v46 = vsel %vm765_vm3, %v1495_v45, -inf }
 0x787   : > { %1578 = vmax.xlane.f32.xlu0 %v1577_v46  ;;  %v2857_v47 = vpop.f32.mrf.mxu1  ;;  %v2862_v48 = vpop.f32.mrf.mxu0 }
 0x789   : > { %v1573_v49 = vpop.f32.mrf.mxu1 }
 0x78a   : > { %v1580_v50 = vsel %vm765_vm3, %v1573_v49, -inf }
 0x78b   : > { %1581 = vmax.xlane.f32.xlu1 %v1580_v50  ;;  %v2867_v51 = vpop.f32.mrf.mxu1 }
 0x79c   : > { %1675 = vrot.lane.b32.xlu1 %v3487_v37, %s3230_s21 }
 0x79d   : > { %1599 = vrot.lane.b32.xlu0 %v3490_v38, %s3230_s21  ;;  %s2507_s21 = sshll.u32 %s3237_s18, 4  ;;  %s2508_s21 = int_to_ptr.vmem [resolvable:$true] %s2507_s21 }
 0x79e   : > { %s3133_s30 = scalar_lea.vmem %s2508_s21, 256  ;;  %p3140_p12 = scmp.lt.s32.totalorder %s2508_s21, %s2508_s21 }
 0x79f   : > { %p3134_p9 = scmp.ne.s32.totalorder %s2508_s21, %s3133_s30  ;;  %p3141_p13 = scmp.lt.s32.totalorder %s3133_s30, %s3133_s30 }
 0x7a0   : > { %1753 = vrot.lane.b32.xlu1 %v3490_v38, %s3231_s13 }
 0x7a1   : > { %p3142_p0 = por %p3141_p13, %p3140_p12 }
 0x7a4   : > { %1831 = vrot.lane.b32.xlu1 %v3487_v37, %s3231_s13  ;;  %s3755_s13 = sadd.s32 4294967295, %s3215_s26  }
 0x7a5   : > { %p3675_p4 = scmp.eq.s32.totalorder %s3755_s13, 1 }
 0x7a7   : > { %p3135_p10 = pnand %p3134_p9, %p3675_p4 }
 0x7a8   : > { %1829 = vrot.lane.b32.xlu1 %v3487_v37, %s3232_s10 }
 0x7a9   : > { %p3136_p7 = pneg %p3135_p10 }
 0x7ab   : > { %p3143_p2 = pnand %p3142_p0, %p3136_p7 }
 0x810   : > { %v1579_v52 = vpop.xlane.xlu0 %1578 }
 0x811   : > { %v1583_v53 = vsub.f32 %v1495_v45, %v1579_v52  ;;  %v2113_v45 = vld [vmem:[%s3423_s17] sm:$0xff] }
 0x813   : > { %v1585_v54 = vmul.f32 1.442695, %v1583_v53 }
 0x814   : > { %v1600_v55 = vpop.permute.xlu0 %1599  ;;  %v1582_v56 = vpop.xlane.xlu1 %1581 }
 0x815   : > { %3051 = vpow2.f32 %v1585_v54  ;;  %v1584_v57 = vsub.f32 %v1573_v49, %v1582_v56  ;;  %2869 = vmatpush3.msra.mxu0 %v1600_v55 }
 0x816   : > { %2878 = vmatprep.subr.mxu0 %v3221_v36 }
 0x817   : > { %v1587_v58 = vmul.f32 1.442695, %v1584_v57 }
 0x818   : > { %v1676_v59 = vpop.permute.xlu1 %1675 }
 0x819   : > { %3053 = vpow2.f32 %v1587_v58  ;;  %2874 = vmatpush3.msra.mxu1 %v1676_v59 }
 0x81a   : > { %2883 = vmatprep.subr.mxu1 %v3221_v36 }
 0x81c   : > { %v1754_v4 = vpop.permute.xlu1 %1753 }
 0x820   : > { %v1832_v10 = vpop.permute.xlu1 %1831 }
 0x822   : > { %v3052_v60 = vpop.eup %3051 }
 0x823   : > { %v1589_v61 = vsel %vm765_vm3, %v3052_v60, 0.0 }
 0x824   : > { %1590 = vadd.xlane.f32.xlu0 %v1589_v61  ;;  %v1830_v13 = vpop.permute.xlu1 %1829 }
 0x826   : > { %v3054_v62 = vpop.eup %3053 }
 0x827   : > { %v1592_v63 = vsel %vm765_vm3, %v3054_v62, 0.0 }
 0x828   : > { %1593 = vadd.xlane.f32.xlu0 %v1592_v63 }
 0x83e   : > { %1751 = vrot.lane.b32.xlu0 %v3490_v38, %s3232_s10 }
 0x8ad   : > { %v1591_v0 = vpop.xlane.xlu0 %1590 }
 0x8ae   : > { %3055 = vrcp.f32 %v1591_v0 }
 0x8b1   : > { %v1594_v1 = vpop.xlane.xlu0 %1593 }
 0x8b2   : > { %3057 = vrcp.f32 %v1594_v1 }
 0x8b5   : > { %v1752_v12 = vpop.permute.xlu0 %1751 }
 0x8bb   : > { %v3056_v5 = vpop.eup %3055 }
 0x8bc   : > { %v1597_v6 = vmul.f32 %v3056_v5, %v3052_v60 }
 0x8be   : > { %2871 = vmatmul.mubr.msk.f32.vlgmr.msra.gmra.mxu0 %vm765_vm3, %v1597_v6 }
 0x8bf   : > { %v3058_v8 = vpop.eup %3057  ;;  %2879 = vmatpush3.xpose.msk.msra.mxu0 %vm765_vm3, %v1754_v4  ;;  %2880 = vmatprep.mubr.msk.f32.mxu0 %vm3222_vm2, %v3221_v36 }
 0x8c0   : > { %v1598_v11 = vmul.f32 %v3058_v8, %v3054_v62  ;;  %2888 = vmatprep.subr.mxu0 %v3221_v36 }
 0x8c2   : > { %2876 = vmatmul.mubr.msk.f32.vlgmr.msra.gmra.mxu1 %vm765_vm3, %v1598_v11  ;;  %2881 = vmatmul.mubr.msk.f32.vlgmr.msra.gmra.mxu0 %vm765_vm3, %v1752_v12 }
 0x8c3   : > { %2884 = vmatpush3.xpose.msk.msra.mxu1 %vm765_vm3, %v1832_v10  ;;  %2885 = vmatprep.mubr.msk.f32.mxu1 %vm3222_vm2, %v3221_v36 }
 0x8c4   : > { %2893 = vmatprep.subr.mxu1 %v3221_v36  ;;  %2890 = vmatprep.mubr.msk.f32.mxu0 %vm3222_vm2, %v3221_v36 }
 0x8c6   : > { %2886 = vmatmul.mubr.msk.f32.vlgmr.msra.gmra.mxu1 %vm765_vm3, %v1830_v13 }
 0x8c7   : > { %2895 = vmatprep.mubr.msk.f32.mxu1 %vm3222_vm2, %v3221_v36 }
 0x97e   : > { %v1671_v14 = vpop.f32.mrf.mxu0 }
 0x980   : > { %v2872_v15 = vpop.f32.mrf.mxu0 }
 0x982   : > { %v1747_v16 = vpop.f32.mrf.mxu1  ;;  %v1825_v17 = vpop.f32.mrf.mxu0 }
 0x983   : > { %v1907_v18 = vsel %vm765_vm3, %v1825_v17, -inf }
 0x984   : > { %1908 = vmax.xlane.f32.xlu0 %v1907_v18  ;;  %v2877_v19 = vpop.f32.mrf.mxu1  ;;  %v2882_v20 = vpop.f32.mrf.mxu0  ;;  %v2253_v18 = vld [vmem:[%s3440_s3 + $0x10] sm:$0xff] }
 0x985   : > { %v2252_v19 = vld [vmem:[%s3440_s3 + $0x8] sm:$0xff]  ;;  %v2251_v20 = vld [vmem:[%s3440_s3] sm:$0xff] }
 0x986   : > { %v1903_v21 = vpop.f32.mrf.mxu1 }
 0x987   : > { %v1910_v22 = vsel %vm765_vm3, %v1903_v21, -inf }
 0x988   : > { %1911 = vmax.xlane.f32.xlu1 %v1910_v22  ;;  %v2887_v23 = vpop.f32.mrf.mxu1 }
 0x999   : > { %2005 = vrot.lane.b32.xlu1 %v3487_v37, %s3233_s12 }
 0x99d   : > { %2083 = vrot.lane.b32.xlu1 %v3565_v42, %s3234_s15 }
 0x9a1   : > { %2085 = vrot.lane.b32.xlu1 %v3567_v44, %s3234_s15  ;;  %v2115_v44 = vld [vmem:[%s3423_s17 + $0x10] sm:$0xff] }
 0x9a5   : > { %2093 = vrot.lane.b32.xlu1 %v1747_v16, %s3235_s28 }
 0xa0d   : > { %v1909_v36 = vpop.xlane.xlu0 %1908 }
 0xa0e   : > { %v1913_v24 = vsub.f32 %v1825_v17, %v1909_v36  ;;  %v2254_v17 = vld [vmem:[%s3440_s3 + $0x18] sm:$0xff] }
 0xa10   : > { %v1915_v25 = vmul.f32 1.442695, %v1913_v24 }
 0xa11   : > { %v1912_v26 = vpop.xlane.xlu1 %1911 }
 0xa12   : > { %3059 = vpow2.f32 %v1915_v25  ;;  %v1914_v27 = vsub.f32 %v1903_v21, %v1912_v26 }
 0xa14   : > { %v1917_v28 = vmul.f32 1.442695, %v1914_v27  ;;  %v2731_v27 = vld [vmem:[%s3753_s14] ss:$0 sm:$0xff] }
 0xa15   : > { %v2006_v29 = vpop.permute.xlu1 %2005 }
 0xa16   : > { %3061 = vpow2.f32 %v1917_v28  ;;  %2894 = vmatpush3.msra.mxu1 %v2006_v29  ;;  %v2732_v29 = vld [vmem:[%s602_s25] ss:$0 sm:$0xff] }
 0xa17   : > { %2909 = vmatprep.subr.mxu1 %v2254_v17 }
 0xa19   : > { %v2084_v50 = vpop.permute.xlu1 %2083 }
 0xa1a   : > { %v2105_v53 = vsel %vm765_vm3, %v3533_v7, %v2084_v50  ;;  %v2728_v7 = vld [vmem:[%s3752_s24] ss:$0 sm:$0xff] }
 0xa1d   : > { %v2086_v51 = vpop.permute.xlu1 %2085 }
 0xa1e   : > { %v2106_v58 = vsel %vm765_vm3, %v3535_v9, %v2086_v51 }
 0xa1f   : > { %v3060_v37 = vpop.eup %3059 }
 0xa20   : > { %v1919_v30 = vsel %vm765_vm3, %v3060_v37, 0.0 }
 0xa21   : > { %1920 = vadd.xlane.f32.xlu0 %v1919_v30  ;;  %v2094_v54 = vpop.permute.xlu1 %2093 }
 0xa22   : > { %v2109_v59 = vsel %vm2107_vm5, %v2106_v58, %v2094_v54 }
 0xa23   : > { %v3062_v31 = vpop.eup %3061 }
 0xa24   : > { %v1922_v32 = vsel %vm765_vm3, %v3062_v31, 0.0 }
 0xa25   : > { %1923 = vadd.xlane.f32.xlu0 %v1922_v32 }
 0xa3b   : > { %1929 = vrot.lane.b32.xlu0 %v3490_v38, %s3233_s12  ;;  %v2114_v38 = vld [vmem:[%s3423_s17 + $0x8] sm:$0xff] }
 0xa3f   : > { %2091 = vrot.lane.b32.xlu0 %v1671_v14, %s3235_s28 }
 0xaaa   : > { %v1921_v33 = vpop.xlane.xlu0 %1920 }
 0xaab   : > { %3063 = vrcp.f32 %v1921_v33 }
 0xaae   : > { %v1924_v34 = vpop.xlane.xlu0 %1923 }
 0xaaf   : > { %3065 = vrcp.f32 %v1924_v34 }
 0xab2   : > { %v1930_v35 = vpop.permute.xlu0 %1929 }
 0xab3   : > { %2889 = vmatpush3.msra.mxu0 %v1930_v35  ;;  %v2404_v35 = vld [vmem:[%s3450_s23 + $0x38] sm:$0xff] }
 0xab4   : > { %2898 = vmatprep.subr.mxu0 %v2116_v43 }
 0xab6   : > { %v2092_v52 = vpop.permute.xlu0 %2091 }
 0xab7   : > { %v2108_v55 = vsel %vm2107_vm5, %v2105_v53, %v2092_v52 }
 0xab8   : > { %v3064_v39 = vpop.eup %3063 }
 0xab9   : > { %v1927_v40 = vmul.f32 %v3064_v39, %v3060_v37  ;;  %v2403_v39 = vld [vmem:[%s3450_s23 + $0x30] sm:$0xff] }
 0xabb   : > { %2891 = vmatmul.mubr.msk.f32.vlgmr.msra.gmra.mxu0 %vm765_vm3, %v1927_v40  ;;  %v2402_v40 = vld [vmem:[%s3450_s23 + $0x28] sm:$0xff] }
 0xabc   : > { %v3066_v41 = vpop.eup %3065  ;;  %2899 = vmatpush3.msra.mxu0 %v2116_v43  ;;  %v2399_v43 = vld [vmem:[%s3450_s23 + $0x10] sm:$0xff] }
 0xabd   : > { %v1928_v42 = vmul.f32 %v3066_v41, %v3062_v31  ;;  %2900 = vmatprep.subr.mxu0 %v2115_v44  ;;  %v2401_v41 = vld [vmem:[%s3450_s23 + $0x20] sm:$0xff] }
 0xabe   : > { %2901 = vmatpush3.msra.mxu0 %v2115_v44  ;;  %v2398_v44 = vld [vmem:[%s3450_s23 + $0x8] sm:$0xff] }
 0xabf   : > { %2896 = vmatmul.mubr.msk.f32.vlgmr.msra.gmra.mxu1 %vm765_vm3, %v1928_v42  ;;  %2902 = vmatprep.subr.mxu0 %v2114_v38  ;;  %v2400_v42 = vld [vmem:[%s3450_s23 + $0x18] sm:$0xff] }
 0xac0   : > { %2903 = vmatpush3.msra.mxu0 %v2114_v38  ;;  %2910 = vmatpush3.msra.mxu1 %v2254_v17  ;;  %v2397_v38 = vld [vmem:[%s3450_s23] sm:$0xff] }
 0xac1   : > { %2904 = vmatprep.subr.mxu0 %v2113_v45  ;;  %2911 = vmatprep.subr.mxu1 %v2253_v18 }
 0xac2   : > { %2905 = vmatpush3.msra.mxu0 %v2113_v45  ;;  %2912 = vmatpush3.msra.mxu1 %v2253_v18  ;;  %v2733_v45 = vld [vmem:[%s610_s4] ss:$0 sm:$0xff] }
 0xac3   : > { %2913 = vmatprep.subr.mxu1 %v2252_v19  ;;  %2920 = vmatprep.subr.mxu0 %v2404_v35 }
 0xac4   : > { %2914 = vmatpush3.msra.mxu1 %v2252_v19 }
 0xac5   : > { %2915 = vmatprep.subr.mxu1 %v2251_v20 }
 0xac6   : > { %2916 = vmatpush3.msra.mxu1 %v2251_v20 }
 0xb7b   : > { %v2001_v46 = vpop.f32.mrf.mxu0 }
 0xb7c   : > { %2099 = vrot.lane.b32.xlu0 %v2001_v46, %s3236_s1 }
 0xb7d   : > { %v2892_v47 = vpop.f32.mrf.mxu0 }
 0xb7f   : > { %v2077_v48 = vpop.f32.mrf.mxu1 }
 0xb80   : > { %2101 = vrot.lane.b32.xlu1 %v2077_v48, %s3236_s1 }
 0xb81   : > { %v2897_v49 = vpop.f32.mrf.mxu1 }
 0xbee   : > { %v2100_v56 = vpop.permute.xlu0 %2099 }
 0xbef   : > { %v2111_v57 = vsel %vm2110_vm4, %v2108_v55, %v2100_v56 }
 0xbf0   : > { %2906 = vmatprep.mubr.msk.f32.mxu0 %vm631_vm1, %v2111_v57 }
 0xbf2   : > { %v2102_v60 = vpop.permute.xlu1 %2101 }
 0xbf3   : > { %v2112_v61 = vsel %vm2110_vm4, %v2109_v59, %v2102_v60 }
 0xbf4   : > { %2907 = vmatmul.mubr.msk.f32.vlgmr.msra.gmra.mxu0 %vm631_vm1, %v2112_v61 }
 0xbf5   : > { %2921 = vmatpush3.msra.mxu0 %v2404_v35 }
 0xbf6   : > { %2922 = vmatprep.subr.mxu0 %v2403_v39 }
 0xbf7   : > { %2923 = vmatpush3.msra.mxu0 %v2403_v39  ;;  %v2736_v39 = vld [vmem:[%s618_s16] ss:$0 sm:$0xff] }
 0xbf8   : > { %2924 = vmatprep.subr.mxu0 %v2402_v40 }
 0xbf9   : > { %2925 = vmatpush3.msra.mxu0 %v2402_v40 }
 0xbfa   : > { %2926 = vmatprep.subr.mxu0 %v2401_v41 }
 0xbfb   : > { %2927 = vmatpush3.msra.mxu0 %v2401_v41 }
 0xbfc   : > { %2928 = vmatprep.subr.mxu0 %v2400_v42 }
 0xbfd   : > { %2929 = vmatpush3.msra.mxu0 %v2400_v42 }
 0xbfe   : > { %2930 = vmatprep.subr.mxu0 %v2399_v43 }
 0xbff   : > { %2931 = vmatpush3.msra.mxu0 %v2399_v43 }
 0xc00   : > { %2932 = vmatprep.subr.mxu0 %v2398_v44 }
 0xc01   : > { %2933 = vmatpush3.msra.mxu0 %v2398_v44 }
 0xc02   : > { %2934 = vmatprep.subr.mxu0 %v2397_v38 }
 0xc03   : > { %2935 = vmatpush3.msra.mxu0 %v2397_v38 }
 0xcb4   : > { %v2908_v62 = vpop.f32.mrf.mxu0 }
 0xcb5   : > { %v2202_v63 = vadd.f32 %v2908_v62, %v2728_v7 }
 0xcb6   : > { %v2196_v0 = vpop.f32.mrf.mxu0 }
 0xcb7   : > { %v3625_v1 = vadd.f32 %v2202_v63, %v3459_v3  ;;  %v2197_v4 = vadd.f32 %v2728_v7, %v2196_v0 }
 0xcb9   : > { %v3628_v5 = vadd.f32 %v2197_v4, %v3457_v2  ;;  %v2210_v9 = vsel %vm631_vm1, %v3625_v1, 0.0 }
 0xcba   : > { %2211 = vadd.xlane.f32.xlu1 %v2210_v9 }
 0xcbb   : > { %v2207_v6 = vsel %vm631_vm1, %v3628_v5, 0.0 }
 0xcbc   : > { %2208 = vadd.xlane.f32.xlu0 %v2207_v6 }
 0xd43   : > { %v2212_v8 = vpop.xlane.xlu1 %2211 }
 0xd44   : > { %v2214_v10 = vmul.f32 0.03125, %v2212_v8 }
 0xd45   : > { %v2209_v11 = vpop.xlane.xlu0 %2208 }
 0xd46   : > { %v2213_v3 = vmul.f32 0.03125, %v2209_v11  ;;  %v2216_v12 = vsub.f32 %v3625_v1, %v2214_v10 }
 0xd48   : > { %v2215_v2 = vsub.f32 %v3628_v5, %v2213_v3  ;;  %v2218_v15 = vmul.f32 %v2216_v12, %v2216_v12 }
 0xd4a   : > { %v2217_v13 = vmul.f32 %v2215_v2, %v2215_v2  ;;  %v2222_v16 = vsel %vm631_vm1, %v2218_v15, 0.0 }
 0xd4c   : > { %v2219_v14 = vsel %vm631_vm1, %v2217_v13, 0.0 }
 0xd4d   : > { %2220 = vadd.xlane.f32.xlu0 %v2219_v14 }
 0xd51   : > { %2223 = vadd.xlane.f32.xlu0 %v2222_v16 }
 0xdd6   : > { %v2221_v21 = vpop.xlane.xlu0 %2220 }
 0xdd7   : > { %v2225_v22 = vmul.f32 0.03125, %v2221_v21 }
 0xdd9   : > { %v2227_v23 = vadd.f32 1e-05, %v2225_v22 }
 0xdda   : > { %v2224_v36 = vpop.xlane.xlu0 %2223 }
 0xddb   : > { %3067 = vrsqrt.f32 %v2227_v23  ;;  %v2226_v24 = vmul.f32 0.03125, %v2224_v36 }
 0xddd   : > { %v2228_v25 = vadd.f32 1e-05, %v2226_v24 }
 0xddf   : > { %3069 = vrsqrt.f32 %v2228_v25 }
 0xde8   : > { %v3068_v26 = vpop.eup %3067 }
 0xde9   : > { %v2231_v28 = vmul.f32 %v3068_v26, %v2215_v2 }
 0xdeb   : > { %v2240_v37 = vmul.f32 %v2731_v27, %v2231_v28 }
 0xdec   : > { %v3070_v30 = vpop.eup %3069 }
 0xded   : > { %v2232_v31 = vmul.f32 %v3070_v30, %v2216_v12  ;;  %v2249_v32 = vadd.f32 %v2732_v29, %v2240_v37 }
 0xdef   : > { %v2241_v33 = vmul.f32 %v2731_v27, %v2232_v31  ;;  %2917 = vmatprep.mubr.msk.f32.mxu1 %vm631_vm1, %v2249_v32 }
 0xdf1   : > { %v2250_v34 = vadd.f32 %v2732_v29, %v2241_v33 }
 0xdf3   : > { %2918 = vmatmul.mubr.msk.f32.vlgmr.msra.gmra.mxu1 %vm631_vm1, %v2250_v34 }
 0xeb3   : > { %v2919_v46 = vpop.f32.mrf.mxu1 }
 0xeb4   : > { %v2340_v47 = vadd.f32 %v2919_v46, %v2733_v45 }
 0xeb5   : > { %v2334_v48 = vpop.f32.mrf.mxu1 }
 0xeb6   : > { %v2346_v49 = vmul.f32 0.70710677, %v2340_v47  ;;  %v2335_v50 = vadd.f32 %v2733_v45, %v2334_v48  ;;  %v2344_v33 = vmul.f32 0.5, %v2340_v47 }
 0xeb8   : > { %v2348_v51 = vand.u32 2147483647, %v2346_v49  ;;  %v2345_v52 = vmul.f32 0.70710677, %v2335_v50  ;;  %vm2388_vm6 = vcmp.lt.f32.partialorder %v2346_v49, 0.0  ;;  %v2343_v31 = vmul.f32 0.5, %v2335_v50 }
 0xeba   : > { %v2350_v53 = vmul.f32 0.3275911, %v2348_v51  ;;  %v2347_v54 = vand.u32 2147483647, %v2345_v52  ;;  %v2376_v58 = vsub.f32 0.0, %v2348_v51  ;;  %vm2387_vm7 = vcmp.lt.f32.partialorder %v2345_v52, 0.0 }
 0xebc   : > { %v2352_v55 = vadd.f32 1.0, %v2350_v53  ;;  %v2349_v56 = vmul.f32 0.3275911, %v2347_v54  ;;  %v2375_v59 = vsub.f32 0.0, %v2347_v54  ;;  %v2378_v60 = vmul.f32 %v2376_v58, %v2348_v51 }
 0xebe   : > { %3071 = vrcp.f32 %v2352_v55  ;;  %v2351_v57 = vadd.f32 1.0, %v2349_v56  ;;  %v2377_v7 = vmul.f32 %v2375_v59, %v2347_v54  ;;  %v2381_v63 = vmul.f32 1.442695, %v2378_v60 }
 0xec0   : > { %3073 = vrcp.f32 %v2351_v57  ;;  %v2379_v6 = vmul.f32 1.442695, %v2377_v7 }
 0xec1   : > { %3075 = vpow2.f32 %v2381_v63 }
 0xec2   : > { %3077 = vpow2.f32 %v2379_v6 }
 0xecb   : > { %v3072_v61 = vpop.eup %3071 }
 0xecc   : > { %v2358_v62 = vmul.f32 1.0614054, %v3072_v61 }
 0xecd   : > { %v3074_v0 = vpop.eup %3073 }
 0xece   : > { %v2360_v4 = vadd.f32 -1.4531521, %v2358_v62  ;;  %v2357_v9 = vmul.f32 1.0614054, %v3074_v0  ;;  %v3076_v20 = vpop.eup %3075 }
 0xecf   : > { %v3078_v36 = vpop.eup %3077 }
 0xed0   : > { %v2362_v8 = vmul.f32 %v3072_v61, %v2360_v4  ;;  %v2359_v10 = vadd.f32 -1.4531521, %v2357_v9 }
 0xed2   : > { %v2364_v11 = vadd.f32 1.4214138, %v2362_v8  ;;  %v2361_v3 = vmul.f32 %v3074_v0, %v2359_v10 }
 0xed4   : > { %v2366_v12 = vmul.f32 %v3072_v61, %v2364_v11  ;;  %v2363_v2 = vadd.f32 1.4214138, %v2361_v3 }
 0xed6   : > { %v2368_v13 = vadd.f32 -0.28449672, %v2366_v12  ;;  %v2365_v14 = vmul.f32 %v3074_v0, %v2363_v2 }
 0xed8   : > { %v2370_v15 = vmul.f32 %v3072_v61, %v2368_v13  ;;  %v2367_v16 = vadd.f32 -0.28449672, %v2365_v14 }
 0xeda   : > { %v2372_v17 = vadd.f32 0.2548296, %v2370_v15  ;;  %v2369_v18 = vmul.f32 %v3074_v0, %v2367_v16 }
 0xedc   : > { %v2374_v19 = vmul.f32 %v3072_v61, %v2372_v17  ;;  %v2371_v21 = vadd.f32 0.2548296, %v2369_v18 }
 0xede   : > { %v2384_v22 = vmul.f32 %v3076_v20, %v2374_v19  ;;  %v2373_v23 = vmul.f32 %v3074_v0, %v2371_v21 }
 0xee0   : > { %v2386_v24 = vsub.f32 1.0, %v2384_v22  ;;  %v2383_v25 = vmul.f32 %v3078_v36, %v2373_v23 }
 0xee2   : > { %v2390_v26 = vsub.f32 0.0, %v2386_v24  ;;  %v2385_v27 = vsub.f32 1.0, %v2383_v25 }
 0xee4   : > { %v2392_v28 = vsel %vm2388_vm6, %v2390_v26, %v2386_v24  ;;  %v2389_v29 = vsub.f32 0.0, %v2385_v27 }
 0xee5   : > { %v2394_v37 = vadd.f32 1.0, %v2392_v28 }
 0xee6   : > { %v2391_v30 = vsel %vm2387_vm7, %v2389_v29, %v2385_v27 }
 0xee7   : > { %v2393_v32 = vadd.f32 1.0, %v2391_v30  ;;  %v2396_v35 = vmul.f32 %v2394_v37, %v2344_v33 }
 0xee9   : > { %v2395_v34 = vmul.f32 %v2393_v32, %v2343_v31 }
 0xeeb   : > { %2936 = vmatprep.mubr.msk.f32.mxu0 %vm2412_vm8, %v2395_v34 }
 0xeec   : > { %2937 = vmatmul.mubr.msk.f32.vlgmr.msra.gmra.mxu0 %vm2412_vm8, %v2396_v35 }
 0xfac   : > { %v2938_v40 = vpop.f32.mrf.mxu0 }
 0xfad   : > { %v2491_v41 = vadd.f32 %v2938_v40, %v2736_v39 }
 0xfae   : > { %v2485_v42 = vpop.f32.mrf.mxu0 }
 0xfaf   : > { %v2495_v43 = vadd.f32 %v2491_v41, %v3625_v1  ;;  %v2486_v44 = vadd.f32 %v2736_v39, %v2485_v42 }
 0xfb1   : > { %2497 = vst.msk [vmem:[#allocation7 + $0x8] sm:$0xff] %vm631_vm1, %v2495_v43  ;;  %v2494_v38 = vadd.f32 %v2486_v44, %v3628_v5 }
 0xfb3   : > { %2496 = vst.msk [vmem:[#allocation7] sm:$0xff] %vm631_vm1, %v2494_v38 }
 0xfb4   : > { %3146 = shalt.err (!%p3143_p2)
}
 0xfb5   : > { %s3238_s16 = smov 128   ;;  %s3757_s1 = sld [smem:[#allocation21_spill]] }
 0xfbb   : > { %2946 = dma.vmem_to_hbm [thread:$0]  (%p3675_p4), %s2508_s21, 256, %s3757_s1, [#allocation4], %s3238_s16, %s3238_s16, %s3234_s15  }
 0xfbc   : > { %3190 = dma.done.wait (%p3675_p4), [#allocation4], 256  }
 0xfbd   : > { %3192 = vsyncadd (%p3675_p4), [#allocation4], 4294967040 }
 0xfbe PF: > { %s27_s26 = sadd.s32 1, %s3215_s26   ;;  %s3758_s17 = sld [smem:[#allocation11_spill]] }
 0xfbf   : > { %p24_p3 = scmp.ge.s32.totalorder %s27_s26, 4   ;;  %s3759_s23 = sld [smem:[#allocation14_spill]] }
 0xfc0   : > { %s3760_s24 = sld [smem:[#allocation12_spill]]  ;;  %s3762_s21 = smov %s3199_s22 }
 0xfc1   : > { %s3761_s25 = sld [smem:[#allocation13_spill]]  ;;  %26 = sbr.rel (!%p24_p3) target bundleno = 14 (0xe), region = 146 }
 0xfc4   : > { %s3763_s22 = smov %s3758_s17 }
 0xfc6   :  { %2523 = vsyncpa [#allocation3], 1 }
 0xfc7   :  { %2525 = vsyncpa [#allocation3 + $0x1], 1 }
 0xfc8   :  { %2526 = vsyncpa [#allocation6], 1 }
 0xfc9   :  { %2528 = vsyncpa [#allocation6 + $0x1], 1 }
 0xfca   :  { %2529 = vsyncpa [#allocation4], 1 }
 0xfcb   :  { %2531 = vsyncpa [#allocation4 + $0x1], 1 }

</bundles_post_ra>
